<compile_context>
chip_gen: v6e
topology: v6e:2x2x1
jax: 0.10.0
libtpu: 0.0.40
codegen_flags: <defaults>
</compile_context>

<pallas_src>
import jax
import jax.numpy as jnp
from jax.experimental import pallas as pl
from jax.experimental.pallas import tpu as pltpu

# ----------------------------- model dimensions -----------------------------
B = 2                 # batch
C_IN = 1              # grayscale chest x-ray
H = 16
W = 16
K = 3                 # conv kernel
CK = C_IN * K * K     # 9
CKP = 16              # contraction dim padded for the conv-as-matmul
HW = H * W            # 256
C_OUT = 64            # backbone channels
R = 29                # anatomical regions (fixed by the RGRG model)
R_PAD = 32            # padded to a multiple of 8 for TPU tiling
D = 256               # region feature dim (1024 in the real model; small here)
H_ABN = 128           # hidden dim of the "region abnormal" classifier
HID = H_ABN + D       # 384: fused hidden width  [abn hidden | sel hidden]
W1_W = HID + 128      # 512: fused first-layer width [abn1 | sel1 | cls+bbox pad]
HEAD_PAD = 128        # lane-dense packed head output width
# packed output lanes: [0]=class logit, [1:5]=bbox, [8]=abnormal logit,
#                      [16]=selection logit, rest zero padding
RB = 8                # regions processed per grid step
NBLK = R_PAD // RB    # 4 grid steps -> w_reg DMA pipelines against compute


# ------------------------------- fused kernel -------------------------------
def unified_kernel(patches_ref, wconv_ref, bconv_ref,
                   wreg_ref, breg_ref,
                   w1_ref, b1_ref, w2_ref, b2_ref,
                   out_ref, pooled_sc):
    j = pl.program_id(0)

    # ---- stage 1 (step 0 only): conv-as-matmul + ReLU + global avg pool ----
    @pl.when(j == 0)
    def _():
        y = jnp.dot(patches_ref[...], wconv_ref[...],
                    preferred_element_type=jnp.float32)      # [B*HW, C_OUT]
        y = jnp.maximum(y + bconv_ref[...], 0.0)
        for b in range(B):                                   # static loop
            pooled_sc[pl.ds(b, 1), :] = jnp.mean(
                y[b * HW:(b + 1) * HW, :], axis=0, keepdims=True)

    # ---- stage 2: region feature projection for this step's RB regions ----
    pooled = pooled_sc[...]                                  # [B, C_OUT] f32
    reg = jnp.dot(pooled.astype(jnp.bfloat16), wreg_ref[...],
                  preferred_element_type=jnp.float32)        # [B, RB*D]
    reg = jnp.maximum(reg + breg_ref[...], 0.0)              # f32 elementwise

    # [B, RB*D] -> [RB*B, D] via lane-aligned slices + sublane concat
    # (row order: r*B + b; un-permuted on the host side)
    x = jnp.concatenate(
        [reg[:, r * D:(r + 1) * D] for r in range(RB)], axis=0)
    xb = x.astype(jnp.bfloat16)                              # [RB*B, D]

    # ---- stage 3: all heads as two fused, lane-dense matmuls ----
    y1 = jnp.dot(xb, w1_ref[...],
                 preferred_element_type=jnp.float32) + b1_ref[...]  # [n, 512]
    h = jnp.maximum(y1[:, :HID], 0.0)         # ReLU hidden (abn | sel)
    cls_part = y1[:, HID:]                    # [n,128]; lanes 0:8 = cls+bbox
    y2 = jnp.dot(h.astype(jnp.bfloat16), w2_ref[...],
                 preferred_element_type=jnp.float32) + b2_ref[...]  # [n, 128]
    out = y2 + cls_part                       # lanes 0:8 cls/bbox, 8:16 abn,
                                              # 16:24 sel, rest zero
    out_ref[...] = out.reshape(RB, B, HEAD_PAD)


def unified_fused(patches_flat, pk):
    return pl.pallas_call(
        unified_kernel,
        out_shape=jax.ShapeDtypeStruct((R_PAD, B, HEAD_PAD), jnp.float32),
        grid=(NBLK,),
        in_specs=[
            pl.BlockSpec((B * HW, CKP), lambda j: (0, 0)),       # patches
            pl.BlockSpec((CKP, C_OUT), lambda j: (0, 0)),        # w_conv
            pl.BlockSpec((1, C_OUT), lambda j: (0, 0)),          # b_conv
            pl.BlockSpec((C_OUT, RB * D), lambda j: (0, j)),     # w_reg (bf16)
            pl.BlockSpec((1, RB * D), lambda j: (0, j)),         # b_reg
            pl.BlockSpec((D, W1_W), lambda j: (0, 0)),           # fused W1
            pl.BlockSpec((1, W1_W), lambda j: (0, 0)),           # fused b1
            pl.BlockSpec((HID, HEAD_PAD), lambda j: (0, 0)),     # fused W2
            pl.BlockSpec((1, HEAD_PAD), lambda j: (0, 0)),       # fused b2
        ],
        out_specs=pl.BlockSpec((RB, B, HEAD_PAD), lambda j: (j, 0, 0)),
        scratch_shapes=[pltpu.VMEM((B, C_OUT), jnp.float32)],    # pooled
        compiler_params=pltpu.CompilerParams(
            # serial: step 0 writes pooled scratch consumed by later steps
            dimension_semantics=("arbitrary",)),
    )(patches_flat,
      pk["w_conv"], pk["b_conv"],
      pk["w_reg"], pk["b_reg"],
      pk["w_h1"], pk["b_h1"], pk["w_h2"], pk["b_h2"])


# ----------------------------------- glue ------------------------------------
def im2col(x_nhwc, k=K):
    b, h, w, c = x_nhwc.shape
    xp = jnp.pad(x_nhwc, ((0, 0), (1, 1), (1, 1), (0, 0)))
    cols = []
    for dy in range(k):
        for dx in range(k):
            cols.append(xp[:, dy:dy + h, dx:dx + w, :])
    patches = jnp.concatenate(cols, axis=-1)                 # [B, H, W, C*k*k]
    patches = patches.reshape(b, h * w, c * k * k)
    patches = jnp.pad(patches, ((0, 0), (0, 0), (0, CKP - CK)))
    return patches.reshape(b * h * w, CKP)                   # [B*HW, CKP]


def init_params(key):
    ks = jax.random.split(key, 12)
    nrm = lambda k, s, sc: (sc * jax.random.normal(k, s)).astype(jnp.float32)
    return {
        "w_conv":    nrm(ks[0], (CK, C_OUT), 0.30),
        "b_conv":    jnp.zeros((1, C_OUT), jnp.float32),
        "w_reg":     nrm(ks[1], (C_OUT, R_PAD * D), 0.10),
        "b_reg":     nrm(ks[2], (1, R_PAD * D), 0.01),
        "w_cls_box": nrm(ks[3], (D, 8), 0.10),
        "b_cls_box": jnp.zeros((1, 8), jnp.float32),
        "w_abn1":    nrm(ks[4], (D, H_ABN), 0.10),
        "b_abn1":    jnp.zeros((1, H_ABN), jnp.float32),
        "w_abn2":    nrm(ks[5], (H_ABN, 8), 0.10),
        "b_abn2":    jnp.zeros((1, 8), jnp.float32),
        "w_sel1":    nrm(ks[6], (D, D), 0.10),
        "b_sel1":    jnp.zeros((1, D), jnp.float32),
        "w_sel2":    nrm(ks[7], (D, 8), 0.10),
        "b_sel2":    jnp.zeros((1, 8), jnp.float32),
    }


def pack_params(p):
    """Pack per-head weights into fused, lane-dense (and bf16) operands."""
    w_conv = jnp.pad(p["w_conv"], ((0, CKP - CK), (0, 0)))   # [CKP, C_OUT]

    # Fused first layer [D, 512]: cols 0:128 abn1, 128:384 sel1, 384:392 cls+bbox.
    w1 = jnp.zeros((D, W1_W), jnp.float32)
    w1 = w1.at[:, 0:H_ABN].set(p["w_abn1"])
    w1 = w1.at[:, H_ABN:HID].set(p["w_sel1"])
    w1 = w1.at[:, HID:HID + 8].set(p["w_cls_box"])
    b1 = jnp.zeros((1, W1_W), jnp.float32)
    b1 = b1.at[:, 0:H_ABN].set(p["b_abn1"])
    b1 = b1.at[:, H_ABN:HID].set(p["b_sel1"])
    b1 = b1.at[:, HID:HID + 8].set(p["b_cls_box"])

    # Fused block-diagonal second layer [384, 128] -> packed output lanes.
    w2 = jnp.zeros((HID, HEAD_PAD), jnp.float32)
    w2 = w2.at[0:H_ABN, 8:16].set(p["w_abn2"])
    w2 = w2.at[H_ABN:HID, 16:24].set(p["w_sel2"])
    b2 = jnp.zeros((1, HEAD_PAD), jnp.float32)
    b2 = b2.at[:, 8:16].set(p["b_abn2"])
    b2 = b2.at[:, 16:24].set(p["b_sel2"])

    return {
        "w_conv": w_conv,
        "b_conv": p["b_conv"],
        "w_reg": p["w_reg"].astype(jnp.bfloat16),   # halves dominant DMA bytes
        "b_reg": p["b_reg"],
        "w_h1": w1.astype(jnp.bfloat16),
        "b_h1": b1,
        "w_h2": w2.astype(jnp.bfloat16),
        "b_h2": b2,
    }


@jax.jit
def unified_model_forward(image_nchw, packed):
    """Inference-mode forward (self.training == False).

    Returns (detections, class_detected, predicted_abnormal_regions,
             predicted_selection_regions) mirroring UnifiedModel.forward.
    """
    # NCHW (PyTorch) -> NHWC, then im2col for the conv-as-matmul.
    x = jnp.transpose(image_nchw.astype(jnp.float32), (0, 2, 3, 1))
    patches = im2col(x)                                      # [B*HW, CKP]

    out = unified_fused(patches, packed)                     # [R_PAD, B, 128]
    heads = jnp.transpose(out, (1, 0, 2))[:, :R, :]          # [B, R, 128]

    class_logits = heads[..., 0]                             # [B, 29]
    detections = heads[..., 1:5]                             # [B, 29, 4] boxes
    abn_logits = heads[..., 8]                               # [B, 29]
    sel_logits = heads[..., 16]                              # [B, 29]

    class_detected = class_logits > 0.0                      # bool [B, 29]
    # abnormal classifier returns logits > 0 (sigmoid > 0.5), unmasked
    predicted_abnormal_regions = abn_logits > 0.0
    # selection classifier masks by class_detected (only detected regions
    # can be selected)
    predicted_selection_regions = jnp.logical_and(sel_logits > 0.0,
                                                  class_detected)
    return (detections, class_detected,
            predicted_abnormal_regions, predicted_selection_regions)


if __name__ == "__main__":
    key = jax.random.PRNGKey(0)
    k_img, k_par = jax.random.split(key)
    image = jax.random.normal(k_img, (B, C_IN, H, W), dtype=jnp.float32)
    params = init_params(k_par)
    packed = pack_params(params)

    out = unified_model_forward(image, packed)
    out = jax.block_until_ready(out)

    detections, class_detected, pred_abn, pred_sel = out
    assert detections.shape == (B, R, 4)
    assert class_detected.shape == (B, R) and class_detected.dtype == jnp.bool_
    assert pred_abn.shape == (B, R) and pred_abn.dtype == jnp.bool_
    assert pred_sel.shape == (B, R) and pred_sel.dtype == jnp.bool_
    print("KERNEL_OK")
</pallas_src>

<mosaic_0001>
module attributes {stable_mosaic.version = 11 : i64} {
  func.func @unified_kernel(%arg0: i32, %arg1: memref<512x16xf32, #tpu.memory_space<vmem>>, %arg2: memref<16x64xf32, #tpu.memory_space<vmem>>, %arg3: memref<1x64xf32, #tpu.memory_space<vmem>>, %arg4: memref<64x2048xbf16, #tpu.memory_space<vmem>>, %arg5: memref<1x2048xf32, #tpu.memory_space<vmem>>, %arg6: memref<256x512xbf16, #tpu.memory_space<vmem>>, %arg7: memref<1x512xf32, #tpu.memory_space<vmem>>, %arg8: memref<384x128xbf16, #tpu.memory_space<vmem>>, %arg9: memref<1x128xf32, #tpu.memory_space<vmem>>, %arg10: memref<8x2x128xf32, #tpu.memory_space<vmem>>, %arg11: memref<2x64xf32, #tpu.memory_space<vmem>>) attributes {dimension_semantics = [#tpu.dimension_semantics<arbitrary>], iteration_bounds = array<i64: 4>, scalar_prefetch = 0 : i64, scratch_operands = 1 : i64, tpu.core_type = #tpu.core_type<tc>, window_params = [{pipeline_mode = #tpu.pipeline_mode<synchronous>, transform_indices = @transform_0, window_bounds = array<i64: 512, 16>}, {pipeline_mode = #tpu.pipeline_mode<synchronous>, transform_indices = @transform_1, window_bounds = array<i64: 16, 64>}, {pipeline_mode = #tpu.pipeline_mode<synchronous>, transform_indices = @transform_2, window_bounds = array<i64: 1, 64>}, {transform_indices = @transform_3, window_bounds = array<i64: 64, 2048>}, {transform_indices = @transform_4, window_bounds = array<i64: 1, 2048>}, {pipeline_mode = #tpu.pipeline_mode<synchronous>, transform_indices = @transform_5, window_bounds = array<i64: 256, 512>}, {pipeline_mode = #tpu.pipeline_mode<synchronous>, transform_indices = @transform_6, window_bounds = array<i64: 1, 512>}, {pipeline_mode = #tpu.pipeline_mode<synchronous>, transform_indices = @transform_7, window_bounds = array<i64: 384, 128>}, {pipeline_mode = #tpu.pipeline_mode<synchronous>, transform_indices = @transform_8, window_bounds = array<i64: 1, 128>}, {transform_indices = @transform_9, window_bounds = array<i64: 8, 2, 128>}]} {
    %c0_i32 = arith.constant 0 : i32
    %0 = arith.cmpi eq, %arg0, %c0_i32 : i32
    %1 = arith.extui %0 : i1 to i32
    %c0_i32_0 = arith.constant 0 : i32
    %2 = arith.cmpi ne, %1, %c0_i32_0 : i32
    scf.if %2 {
      %c0_21 = arith.constant 0 : index
      %c0_22 = arith.constant 0 : index
      %40 = vector.load %arg1[%c0_21, %c0_22] : memref<512x16xf32, #tpu.memory_space<vmem>>, vector<512x16xf32>
      %c0_23 = arith.constant 0 : index
      %c0_24 = arith.constant 0 : index
      %41 = vector.load %arg2[%c0_23, %c0_24] : memref<16x64xf32, #tpu.memory_space<vmem>>, vector<16x64xf32>
      %cst_25 = arith.constant dense<0.000000e+00> : vector<512x64xf32>
      %42 = tpu.matmul %40, %41, %cst_25 {dimension_numbers = #tpu.dot_dimension_numbers<[1], [0], [0], [1], [0, 0, 1, 1], [], []>} : vector<512x16xf32>, vector<16x64xf32>, vector<512x64xf32> -> vector<512x64xf32>
      %c0_26 = arith.constant 0 : index
      %c0_27 = arith.constant 0 : index
      %43 = vector.load %arg3[%c0_26, %c0_27] : memref<1x64xf32, #tpu.memory_space<vmem>>, vector<1x64xf32>
      %44 = vector.broadcast %43 : vector<1x64xf32> to vector<512x64xf32>
      %45 = arith.addf %42, %44 : vector<512x64xf32>
      %cst_28 = arith.constant 0.000000e+00 : f32
      %46 = vector.broadcast %cst_28 : f32 to vector<512x64xf32>
      %47 = arith.maximumf %45, %46 : vector<512x64xf32>
      %48 = vector.extract_strided_slice %47 {offsets = [0, 0], sizes = [256, 64], strides = [1, 1]} : vector<512x64xf32> to vector<256x64xf32>
      %cst_29 = arith.constant dense<0.000000e+00> : vector<64xf32>
      %49 = vector.multi_reduction <add>, %48, %cst_29 [0] : vector<256x64xf32> to vector<64xf32>
      %50 = vector.shape_cast %49 : vector<64xf32> to vector<1x64xf32>
      %cst_30 = arith.constant 2.560000e+02 : f32
      %51 = vector.broadcast %cst_30 : f32 to vector<1x64xf32>
      %52 = arith.divf %50, %51 : vector<1x64xf32>
      %c0_31 = arith.constant 0 : index
      %c0_32 = arith.constant 0 : index
      %53 = vector.load %arg11[%c0_31, %c0_32] : memref<2x64xf32, #tpu.memory_space<vmem>>, vector<1x64xf32>
      tpu.vector_store %arg11[%c0_31, %c0_32], %52 {strides = array<i32>} : memref<2x64xf32, #tpu.memory_space<vmem>>, vector<1x64xf32>,
      %54 = vector.extract_strided_slice %47 {offsets = [256, 0], sizes = [256, 64], strides = [1, 1]} : vector<512x64xf32> to vector<256x64xf32>
      %cst_33 = arith.constant dense<0.000000e+00> : vector<64xf32>
      %55 = vector.multi_reduction <add>, %54, %cst_33 [0] : vector<256x64xf32> to vector<64xf32>
      %56 = vector.shape_cast %55 : vector<64xf32> to vector<1x64xf32>
      %cst_34 = arith.constant 2.560000e+02 : f32
      %57 = vector.broadcast %cst_34 : f32 to vector<1x64xf32>
      %58 = arith.divf %56, %57 : vector<1x64xf32>
      %c1 = arith.constant 1 : index
      %c0_35 = arith.constant 0 : index
      %59 = vector.load %arg11[%c1, %c0_35] : memref<2x64xf32, #tpu.memory_space<vmem>>, vector<1x64xf32>
      tpu.vector_store %arg11[%c1, %c0_35], %58 {strides = array<i32>} : memref<2x64xf32, #tpu.memory_space<vmem>>, vector<1x64xf32>,
    } else {
    }
    %c0 = arith.constant 0 : index
    %c0_1 = arith.constant 0 : index
    %3 = vector.load %arg11[%c0, %c0_1] : memref<2x64xf32, #tpu.memory_space<vmem>>, vector<2x64xf32>
    %4 = arith.truncf %3 : vector<2x64xf32> to vector<2x64xbf16>
    %c0_2 = arith.constant 0 : index
    %c0_3 = arith.constant 0 : index
    %5 = vector.load %arg4[%c0_2, %c0_3] : memref<64x2048xbf16, #tpu.memory_space<vmem>>, vector<64x2048xbf16>
    %cst = arith.constant dense<0.000000e+00> : vector<2x2048xf32>
    %6 = tpu.matmul %4, %5, %cst {dimension_numbers = #tpu.dot_dimension_numbers<[1], [0], [0], [1], [0, 0, 1, 1], [], []>} : vector<2x64xbf16>, vector<64x2048xbf16>, vector<2x2048xf32> -> vector<2x2048xf32>
    %c0_4 = arith.constant 0 : index
    %c0_5 = arith.constant 0 : index
    %7 = vector.load %arg5[%c0_4, %c0_5] : memref<1x2048xf32, #tpu.memory_space<vmem>>, vector<1x2048xf32>
    %8 = vector.broadcast %7 : vector<1x2048xf32> to vector<2x2048xf32>
    %9 = arith.addf %6, %8 : vector<2x2048xf32>
    %cst_6 = arith.constant 0.000000e+00 : f32
    %10 = vector.broadcast %cst_6 : f32 to vector<2x2048xf32>
    %11 = arith.maximumf %9, %10 : vector<2x2048xf32>
    %12 = vector.extract_strided_slice %11 {offsets = [0, 0], sizes = [2, 256], strides = [1, 1]} : vector<2x2048xf32> to vector<2x256xf32>
    %13 = vector.extract_strided_slice %11 {offsets = [0, 256], sizes = [2, 256], strides = [1, 1]} : vector<2x2048xf32> to vector<2x256xf32>
    %14 = vector.extract_strided_slice %11 {offsets = [0, 512], sizes = [2, 256], strides = [1, 1]} : vector<2x2048xf32> to vector<2x256xf32>
    %15 = vector.extract_strided_slice %11 {offsets = [0, 768], sizes = [2, 256], strides = [1, 1]} : vector<2x2048xf32> to vector<2x256xf32>
    %16 = vector.extract_strided_slice %11 {offsets = [0, 1024], sizes = [2, 256], strides = [1, 1]} : vector<2x2048xf32> to vector<2x256xf32>
    %17 = vector.extract_strided_slice %11 {offsets = [0, 1280], sizes = [2, 256], strides = [1, 1]} : vector<2x2048xf32> to vector<2x256xf32>
    %18 = vector.extract_strided_slice %11 {offsets = [0, 1536], sizes = [2, 256], strides = [1, 1]} : vector<2x2048xf32> to vector<2x256xf32>
    %19 = vector.extract_strided_slice %11 {offsets = [0, 1792], sizes = [2, 256], strides = [1, 1]} : vector<2x2048xf32> to vector<2x256xf32>
    %20 = tpu.concatenate %12, %13, %14, %15, %16, %17, %18, %19 in 0 : vector<2x256xf32>, vector<2x256xf32>, vector<2x256xf32>, vector<2x256xf32>, vector<2x256xf32>, vector<2x256xf32>, vector<2x256xf32>, vector<2x256xf32> -> vector<16x256xf32>
    %21 = arith.truncf %20 : vector<16x256xf32> to vector<16x256xbf16>
    %c0_7 = arith.constant 0 : index
    %c0_8 = arith.constant 0 : index
    %22 = vector.load %arg6[%c0_7, %c0_8] : memref<256x512xbf16, #tpu.memory_space<vmem>>, vector<256x512xbf16>
    %cst_9 = arith.constant dense<0.000000e+00> : vector<16x512xf32>
    %23 = tpu.matmul %21, %22, %cst_9 {dimension_numbers = #tpu.dot_dimension_numbers<[1], [0], [0], [1], [0, 0, 1, 1], [], []>} : vector<16x256xbf16>, vector<256x512xbf16>, vector<16x512xf32> -> vector<16x512xf32>
    %c0_10 = arith.constant 0 : index
    %c0_11 = arith.constant 0 : index
    %24 = vector.load %arg7[%c0_10, %c0_11] : memref<1x512xf32, #tpu.memory_space<vmem>>, vector<1x512xf32>
    %25 = vector.broadcast %24 : vector<1x512xf32> to vector<16x512xf32>
    %26 = arith.addf %23, %25 : vector<16x512xf32>
    %27 = vector.extract_strided_slice %26 {offsets = [0, 0], sizes = [16, 384], strides = [1, 1]} : vector<16x512xf32> to vector<16x384xf32>
    %cst_12 = arith.constant 0.000000e+00 : f32
    %28 = vector.broadcast %cst_12 : f32 to vector<16x384xf32>
    %29 = arith.maximumf %27, %28 : vector<16x384xf32>
    %30 = vector.extract_strided_slice %26 {offsets = [0, 384], sizes = [16, 128], strides = [1, 1]} : vector<16x512xf32> to vector<16x128xf32>
    %31 = arith.truncf %29 : vector<16x384xf32> to vector<16x384xbf16>
    %c0_13 = arith.constant 0 : index
    %c0_14 = arith.constant 0 : index
    %32 = vector.load %arg8[%c0_13, %c0_14] : memref<384x128xbf16, #tpu.memory_space<vmem>>, vector<384x128xbf16>
    %cst_15 = arith.constant dense<0.000000e+00> : vector<16x128xf32>
    %33 = tpu.matmul %31, %32, %cst_15 {dimension_numbers = #tpu.dot_dimension_numbers<[1], [0], [0], [1], [0, 0, 1, 1], [], []>} : vector<16x384xbf16>, vector<384x128xbf16>, vector<16x128xf32> -> vector<16x128xf32>
    %c0_16 = arith.constant 0 : index
    %c0_17 = arith.constant 0 : index
    %34 = vector.load %arg9[%c0_16, %c0_17] : memref<1x128xf32, #tpu.memory_space<vmem>>, vector<1x128xf32>
    %35 = vector.broadcast %34 : vector<1x128xf32> to vector<16x128xf32>
    %36 = arith.addf %33, %35 : vector<16x128xf32>
    %37 = arith.addf %36, %30 : vector<16x128xf32>
    %38 = vector.shape_cast %37 : vector<16x128xf32> to vector<8x2x128xf32>
    %c0_18 = arith.constant 0 : index
    %c0_19 = arith.constant 0 : index
    %c0_20 = arith.constant 0 : index
    %39 = vector.load %arg10[%c0_18, %c0_19, %c0_20] : memref<8x2x128xf32, #tpu.memory_space<vmem>>, vector<8x2x128xf32>
    tpu.vector_store %arg10[%c0_18, %c0_19, %c0_20], %38 {strides = array<i32>} : memref<8x2x128xf32, #tpu.memory_space<vmem>>, vector<8x2x128xf32>,
    return
  }
  func.func @transform_0(%arg0: i32) -> (i32, i32) {
    %c0_i32 = arith.constant 0 : i32
    %c0_i32_0 = arith.constant 0 : i32
    %c0_i32_1 = arith.constant 0 : i32
    return %c0_i32, %c0_i32_0 : i32, i32
  }
  func.func @transform_1(%arg0: i32) -> (i32, i32) {
    %c0_i32 = arith.constant 0 : i32
    %c0_i32_0 = arith.constant 0 : i32
    %c0_i32_1 = arith.constant 0 : i32
    return %c0_i32, %c0_i32_0 : i32, i32
  }
  func.func @transform_2(%arg0: i32) -> (i32, i32) {
    %c0_i32 = arith.constant 0 : i32
    %c0_i32_0 = arith.constant 0 : i32
    %c0_i32_1 = arith.constant 0 : i32
    return %c0_i32, %c0_i32_0 : i32, i32
  }
  func.func @transform_3(%arg0: i32) -> (i32, i32) {
    %c0_i32 = arith.constant 0 : i32
    %c0_i32_0 = arith.constant 0 : i32
    return %c0_i32, %arg0 : i32, i32
  }
  func.func @transform_4(%arg0: i32) -> (i32, i32) {
    %c0_i32 = arith.constant 0 : i32
    %c0_i32_0 = arith.constant 0 : i32
    return %c0_i32, %arg0 : i32, i32
  }
  func.func @transform_5(%arg0: i32) -> (i32, i32) {
    %c0_i32 = arith.constant 0 : i32
    %c0_i32_0 = arith.constant 0 : i32
    %c0_i32_1 = arith.constant 0 : i32
    return %c0_i32, %c0_i32_0 : i32, i32
  }
  func.func @transform_6(%arg0: i32) -> (i32, i32) {
    %c0_i32 = arith.constant 0 : i32
    %c0_i32_0 = arith.constant 0 : i32
    %c0_i32_1 = arith.constant 0 : i32
    return %c0_i32, %c0_i32_0 : i32, i32
  }
  func.func @transform_7(%arg0: i32) -> (i32, i32) {
    %c0_i32 = arith.constant 0 : i32
    %c0_i32_0 = arith.constant 0 : i32
    %c0_i32_1 = arith.constant 0 : i32
    return %c0_i32, %c0_i32_0 : i32, i32
  }
  func.func @transform_8(%arg0: i32) -> (i32, i32) {
    %c0_i32 = arith.constant 0 : i32
    %c0_i32_0 = arith.constant 0 : i32
    %c0_i32_1 = arith.constant 0 : i32
    return %c0_i32, %c0_i32_0 : i32, i32
  }
  func.func @transform_9(%arg0: i32) -> (i32, i32, i32) {
    %c0_i32 = arith.constant 0 : i32
    %c0_i32_0 = arith.constant 0 : i32
    %c0_i32_1 = arith.constant 0 : i32
    return %arg0, %c0_i32, %c0_i32_0 : i32, i32, i32
  }
}

</mosaic_0001>

<bundles_post_ra>
// kernel: unified_model_forward.1
= control target key start
LH: loop header
LB: loop body
LE: loop exit
PB: predicated region body
PF: predicated region fallthrough
CT: control target
= control target key end

     0   :  { %s5026_s0 = inlined_call_operand.vmem [shape: f32[512,16], index: 0, kind: input, shape index: {}]   ;;  %s5027_s1 = inlined_call_operand.vmem [shape: f32[16,64], index: 1, kind: input, shape index: {}]   ;;  %s5028_s2 = inlined_call_operand.vmem [shape: f32[1,64], index: 2, kind: input, shape index: {}]   ;;  %s5029_s3 = inlined_call_operand.vmem [shape: bf16[64,8192], index: 3, kind: input, shape index: {}]   ;;  %s5030_s4 = inlined_call_operand.hbm [shape: f32[1,8192], index: 4, kind: input, shape index: {}]   ;;  %s5031_s5 = inlined_call_operand.hbm [shape: bf16[256,512], index: 5, kind: input, shape index: {}]   ;;  %s5032_s6 = inlined_call_operand.hbm [shape: f32[1,512], index: 6, kind: input, shape index: {}]   ;;  %s5033_s7 = inlined_call_operand.vmem [shape: bf16[384,128], index: 7, kind: input, shape index: {}]   ;;  %s5034_s8 = inlined_call_operand.hbm [shape: f32[1,128], index: 8, kind: input, shape index: {}]   ;;  %s5035_s9 = inlined_call_operand.vmem [shape: f32[32,2,128], index: 9, kind: output, shape index: {}]  }
   0x1   :  { %5038 = sst [smem:[#allocation14_spill]] %s5029_s3 }
   0x2   :  { %14 = vsyncpa [#allocation5], 0 }
   0x3   :  { %16 = vsyncpa [#allocation5 + $0x1], 0 }
   0x4   :  { %17 = vsyncpa [#allocation7], 0 }
   0x5   :  { %18 = vsyncpa [#allocation10], 0  ;;  %s4122_s30 = smov 0   ;;  %s4124_s10 = smov 0  }
   0x6   :  { %s4126_s11 = smov 0   ;;  %s4128_s12 = smov 0  }
   0x7 LB: > { %s4141_s13 = sadd.s32 4294967295, %s4060_s12   ;;  %s4144_s14 = sadd.s32 1, %s4060_s12   ;;  %s4060_s12 = sphi %s4128_s12, %s5053_s12   ;;  %s4056_s11 = sphi %s4126_s11, %s5052_s11   ;;  %s4052_s10 = sphi %s4124_s10, %s5051_s10   ;;  %s4048_s30 = sphi %s4122_s30, %s5050_s30  }
   0x8   : > { %s91_s15 = ssub.s32 %s4060_s12, %s4144_s14  ;;  %s94_s16 = sadd.s32 1, %s4056_s11 }
   0x9   : > { %p92_p0 = scmp.eq.s32.totalorder %s91_s15, 0  ;;  %p101_p1 = scmp.ne.s32.totalorder %s4056_s11, %s4052_s10 }
   0xa   : > { %p102_p2 = scmp.eq.s32.totalorder %s4060_s12, 0  ;;  %p133_p3 = scmp.ne.s32.totalorder %s4052_s10, %s4048_s30 }
   0xb   : > { %s4154_s17 = scalar_select %p92_p0, %s4056_s11, %s94_s16  }
   0xc   : > { %p4156_p4 = por %p102_p2, %p101_p1  ;;  %p5036_p5 = scmp.eq.s32.totalorder %s4141_s13, 0 }
   0xd   : > { %p3248_p6 = scmp.ge.s32.totalorder %s4060_s12, 1  ;;  %p254_p7 = scmp.lt.s32.totalorder %s4060_s12, 5 }
   0xe   : > { %p4165_p8 = por %p5036_p5, %p133_p3  ;;  %s4062_s21 = smov [#allocation6]  }
   0xf   : > { %p4170_p10 = pnand %p3248_p6, %p254_p7  ;;  %s275_s22 = sshll.u32 %s4062_s21, 4  ;;  %s276_s22 = int_to_ptr.vmem [resolvable:$true] %s275_s22 }
  0x10   : > { %s5040_s19 = scalar_select %p4165_p8, 1, 0 }
  0x11   : > { %p3737_p11 = pneg %p4170_p10  ;;  %s4063_s24 = smov [#allocation8]  }
  0x12   : > { %s289_s25 = sshll.u32 %s4063_s24, 4  ;;  %s4064_s26 = smov [#allocation9]   ;;  %s290_s25 = int_to_ptr.vmem [resolvable:$true] %s289_s25 }
  0x13   : > { %p4178_p12 = pnand %p3737_p11, %p5036_p5  ;;  %s303_s27 = sshll.u32 %s4064_s26, 4  ;;  %s304_s27 = int_to_ptr.vmem [resolvable:$true] %s303_s27 }
  0x14   : > { %s3925_s28 = scalar_lea.vmem %s276_s22, 8192  ;;  %p3933_p3 = scmp.lt.s32.totalorder %s276_s22, %s276_s22 }
  0x15   : > { %p3916_p13 = pneg %p4178_p12  ;;  %p3926_p0 = scmp.ne.s32.totalorder %s276_s22, %s3925_s28 }
  0x16   : > { %p3934_p6 = scmp.lt.s32.totalorder %s3925_s28, %s3925_s28 }
  0x17   : > { %p3928_p1 = pnand %p3926_p0, %p3916_p13 }
  0x18   : > { %p3935_p7 = por %p3934_p6, %p3933_p3 }
  0x19   : > { %p3929_p2 = pneg %p3928_p1 }
  0x1b   : > { %p3936_p11 = pnand %p3935_p7, %p3929_p2 }
  0x1d   : > { %3939 = shalt.err (!%p3936_p11)
}
  0x1e   : > { %s4065_s29 = smov 256   ;;  %s4066_s30 = smov 16  }
  0x1f   : > { %3740 = dma.hbm_to_vmem [thread:$0]  (!%p4178_p12), %s5031_s5, 8192, %s276_s22, [#allocation7], %s4065_s29, %s4065_s29, %s4066_s30  }
  0x20   : > { %s3951_s21 = scalar_lea.vmem %s290_s25, 64  ;;  %p3959_p5 = scmp.lt.s32.totalorder %s290_s25, %s290_s25 }
  0x21   : > { %p3952_p9 = scmp.ne.s32.totalorder %s290_s25, %s3951_s21  ;;  %p3960_p8 = scmp.lt.s32.totalorder %s3951_s21, %s3951_s21 }
  0x23   : > { %p3954_p0 = pnand %p3952_p9, %p3916_p13  ;;  %p3961_p3 = por %p3960_p8, %p3959_p5 }
  0x25   : > { %p3955_p1 = pneg %p3954_p0 }
  0x27   : > { %p3962_p2 = pnand %p3961_p3, %p3955_p1 }
  0x29   : > { %3965 = shalt.err (!%p3962_p2)
}
  0x2a   : > { %3743 = dma.hbm_to_vmem [thread:$0]  (!%p4178_p12), %s5032_s6, 64, %s290_s25, [#allocation7]  }
  0x2b   : > { %s3977_s22 = scalar_lea.vmem %s304_s27, 16  ;;  %s3984_s28 = scalar_lea.vmem %s304_s27, 32 }
  0x2c   : > { %p3978_p6 = scmp.ne.s32.totalorder %s304_s27, %s3977_s22  ;;  %p3985_p11 = scmp.lt.s32.totalorder %s304_s27, %s304_s27 }
  0x2d   : > { %p3986_p0 = scmp.lt.s32.totalorder %s3984_s28, %s3977_s22 }
  0x2e   : > { %p3980_p7 = pnand %p3978_p6, %p3916_p13 }
  0x2f   : > { %p3987_p5 = por %p3986_p0, %p3985_p11 }
  0x30   : > { %p3981_p9 = pneg %p3980_p7 }
  0x32   : > { %p3988_p8 = pnand %p3987_p5, %p3981_p9 }
  0x34   : > { %3991 = shalt.err (!%p3988_p8)
}
  0x35   : > { %3746 = dma.hbm_to_vmem [thread:$0]  (!%p4178_p12), %s5034_s8, 16, %s304_s27, [#allocation10]  }
  0x36   : > { %p3252_p1 = scmp.ge.s32.totalorder %s4060_s12, 4 }
  0x38   : > { %310 = sbr.rel (%p3252_p1) target bundleno = 127 (0x7f), region = 44 }
  0x3d   : > { %313 = sbr.rel (!%p4156_p4) target bundleno = 103 (0x67), region = 48  ;;  %s315_s25 = sand.u32 (%p4156_p4), 1, %s4056_s11  }
  0x3e   : > { %s3500_s15 = sshll.u32 (%p4156_p4), %s4060_s12, 6  ;;  %s3253_s16 = sshll.u32 (%p4156_p4), %s315_s25, 9 }
  0x3f   : > { %s5043_s3 = sld [smem:[#allocation14_spill]] (%p4156_p4)  ;;  %s4221_s23 = scalar_lea.vmem (%p4156_p4), [#allocation3], %s3253_s16 }
  0x45   : > { %s4216_s26 = scalar_lea.vmem %s5043_s3, %s3500_s15 }
  0x46   : > { %v333_v0 = vld [vmem:[%s4216_s26] sm:$0xff]  ;;  %v335_v1 = vld [vmem:[%s4216_s26 + $0x8] sm:$0xff]  ;;  %v337_v2 = vld [vmem:[%s4216_s26 + $0x10] sm:$0xff] }
  0x47   : > { %334 = vst [vmem:[%s4221_s23] sm:$0xff] %v333_v0  ;;  %336 = vst [vmem:[%s4221_s23 + $0x8] sm:$0xff] %v335_v1  ;;  %v339_v3 = vld [vmem:[%s4216_s26 + $0x18] sm:$0xff]  ;;  %v341_v4 = vld [vmem:[%s4216_s26 + $0x20] sm:$0xff] }
  0x48   : > { %338 = vst [vmem:[%s4221_s23 + $0x10] sm:$0xff] %v337_v2  ;;  %v343_v5 = vld [vmem:[%s4216_s26 + $0x28] sm:$0xff]  ;;  %340 = vst [vmem:[%s4221_s23 + $0x18] sm:$0xff] %v339_v3  ;;  %v345_v6 = vld [vmem:[%s4216_s26 + $0x30] sm:$0xff] }
  0x49   : > { %342 = vst [vmem:[%s4221_s23 + $0x20] sm:$0xff] %v341_v4  ;;  %344 = vst [vmem:[%s4221_s23 + $0x28] sm:$0xff] %v343_v5  ;;  %v347_v7 = vld [vmem:[%s4216_s26 + $0x38] sm:$0xff]  ;;  %v349_v8 = vld [vmem:[%s4216_s26 + $0x100] sm:$0xff] }
  0x4a   : > { %346 = vst [vmem:[%s4221_s23 + $0x30] sm:$0xff] %v345_v6  ;;  %348 = vst [vmem:[%s4221_s23 + $0x38] sm:$0xff] %v347_v7  ;;  %v351_v9 = vld [vmem:[%s4216_s26 + $0x108] sm:$0xff]  ;;  %v353_v10 = vld [vmem:[%s4216_s26 + $0x110] sm:$0xff] }
  0x4b   : > { %350 = vst [vmem:[%s4221_s23 + $0x40] sm:$0xff] %v349_v8  ;;  %v355_v11 = vld [vmem:[%s4216_s26 + $0x118] sm:$0xff]  ;;  %352 = vst [vmem:[%s4221_s23 + $0x48] sm:$0xff] %v351_v9  ;;  %v357_v12 = vld [vmem:[%s4216_s26 + $0x120] sm:$0xff] }
  0x4c   : > { %354 = vst [vmem:[%s4221_s23 + $0x50] sm:$0xff] %v353_v10  ;;  %356 = vst [vmem:[%s4221_s23 + $0x58] sm:$0xff] %v355_v11  ;;  %v359_v13 = vld [vmem:[%s4216_s26 + $0x128] sm:$0xff]  ;;  %v361_v14 = vld [vmem:[%s4216_s26 + $0x130] sm:$0xff] }
  0x4d   : > { %358 = vst [vmem:[%s4221_s23 + $0x60] sm:$0xff] %v357_v12  ;;  %360 = vst [vmem:[%s4221_s23 + $0x68] sm:$0xff] %v359_v13  ;;  %v363_v15 = vld [vmem:[%s4216_s26 + $0x138] sm:$0xff]  ;;  %v365_v16 = vld [vmem:[%s4216_s26 + $0x200] sm:$0xff] }
  0x4e   : > { %362 = vst [vmem:[%s4221_s23 + $0x70] sm:$0xff] %v361_v14  ;;  %v367_v17 = vld [vmem:[%s4216_s26 + $0x208] sm:$0xff]  ;;  %364 = vst [vmem:[%s4221_s23 + $0x78] sm:$0xff] %v363_v15  ;;  %v369_v18 = vld [vmem:[%s4216_s26 + $0x210] sm:$0xff] }
  0x4f   : > { %366 = vst [vmem:[%s4221_s23 + $0x80] sm:$0xff] %v365_v16  ;;  %368 = vst [vmem:[%s4221_s23 + $0x88] sm:$0xff] %v367_v17  ;;  %v371_v19 = vld [vmem:[%s4216_s26 + $0x218] sm:$0xff]  ;;  %v373_v20 = vld [vmem:[%s4216_s26 + $0x220] sm:$0xff] }
  0x50   : > { %370 = vst [vmem:[%s4221_s23 + $0x90] sm:$0xff] %v369_v18  ;;  %372 = vst [vmem:[%s4221_s23 + $0x98] sm:$0xff] %v371_v19  ;;  %v375_v21 = vld [vmem:[%s4216_s26 + $0x228] sm:$0xff]  ;;  %v377_v22 = vld [vmem:[%s4216_s26 + $0x230] sm:$0xff] }
  0x51   : > { %374 = vst [vmem:[%s4221_s23 + $0xa0] sm:$0xff] %v373_v20  ;;  %v379_v23 = vld [vmem:[%s4216_s26 + $0x238] sm:$0xff]  ;;  %376 = vst [vmem:[%s4221_s23 + $0xa8] sm:$0xff] %v375_v21  ;;  %v381_v24 = vld [vmem:[%s4216_s26 + $0x300] sm:$0xff] }
  0x52   : > { %378 = vst [vmem:[%s4221_s23 + $0xb0] sm:$0xff] %v377_v22  ;;  %380 = vst [vmem:[%s4221_s23 + $0xb8] sm:$0xff] %v379_v23  ;;  %v383_v25 = vld [vmem:[%s4216_s26 + $0x308] sm:$0xff]  ;;  %v385_v26 = vld [vmem:[%s4216_s26 + $0x310] sm:$0xff] }
  0x53   : > { %382 = vst [vmem:[%s4221_s23 + $0xc0] sm:$0xff] %v381_v24  ;;  %384 = vst [vmem:[%s4221_s23 + $0xc8] sm:$0xff] %v383_v25  ;;  %v387_v27 = vld [vmem:[%s4216_s26 + $0x318] sm:$0xff]  ;;  %v389_v28 = vld [vmem:[%s4216_s26 + $0x320] sm:$0xff] }
  0x54   : > { %386 = vst [vmem:[%s4221_s23 + $0xd0] sm:$0xff] %v385_v26  ;;  %v391_v29 = vld [vmem:[%s4216_s26 + $0x328] sm:$0xff]  ;;  %388 = vst [vmem:[%s4221_s23 + $0xd8] sm:$0xff] %v387_v27  ;;  %v393_v30 = vld [vmem:[%s4216_s26 + $0x330] sm:$0xff] }
  0x55   : > { %390 = vst [vmem:[%s4221_s23 + $0xe0] sm:$0xff] %v389_v28  ;;  %392 = vst [vmem:[%s4221_s23 + $0xe8] sm:$0xff] %v391_v29  ;;  %v395_v31 = vld [vmem:[%s4216_s26 + $0x338] sm:$0xff]  ;;  %v397_v32 = vld [vmem:[%s4216_s26 + $0x400] sm:$0xff] }
  0x56   : > { %394 = vst [vmem:[%s4221_s23 + $0xf0] sm:$0xff] %v393_v30  ;;  %396 = vst [vmem:[%s4221_s23 + $0xf8] sm:$0xff] %v395_v31  ;;  %v399_v33 = vld [vmem:[%s4216_s26 + $0x408] sm:$0xff]  ;;  %v401_v34 = vld [vmem:[%s4216_s26 + $0x410] sm:$0xff] }
  0x57   : > { %398 = vst [vmem:[%s4221_s23 + $0x100] sm:$0xff] %v397_v32  ;;  %v403_v35 = vld [vmem:[%s4216_s26 + $0x418] sm:$0xff]  ;;  %400 = vst [vmem:[%s4221_s23 + $0x108] sm:$0xff] %v399_v33  ;;  %v405_v36 = vld [vmem:[%s4216_s26 + $0x420] sm:$0xff] }
  0x58   : > { %402 = vst [vmem:[%s4221_s23 + $0x110] sm:$0xff] %v401_v34  ;;  %404 = vst [vmem:[%s4221_s23 + $0x118] sm:$0xff] %v403_v35  ;;  %v407_v37 = vld [vmem:[%s4216_s26 + $0x428] sm:$0xff]  ;;  %v409_v38 = vld [vmem:[%s4216_s26 + $0x430] sm:$0xff] }
  0x59   : > { %406 = vst [vmem:[%s4221_s23 + $0x120] sm:$0xff] %v405_v36  ;;  %408 = vst [vmem:[%s4221_s23 + $0x128] sm:$0xff] %v407_v37  ;;  %v411_v39 = vld [vmem:[%s4216_s26 + $0x438] sm:$0xff]  ;;  %v413_v40 = vld [vmem:[%s4216_s26 + $0x500] sm:$0xff] }
  0x5a   : > { %410 = vst [vmem:[%s4221_s23 + $0x130] sm:$0xff] %v409_v38  ;;  %v415_v41 = vld [vmem:[%s4216_s26 + $0x508] sm:$0xff]  ;;  %412 = vst [vmem:[%s4221_s23 + $0x138] sm:$0xff] %v411_v39  ;;  %v417_v42 = vld [vmem:[%s4216_s26 + $0x510] sm:$0xff] }
  0x5b   : > { %414 = vst [vmem:[%s4221_s23 + $0x140] sm:$0xff] %v413_v40  ;;  %416 = vst [vmem:[%s4221_s23 + $0x148] sm:$0xff] %v415_v41  ;;  %v419_v43 = vld [vmem:[%s4216_s26 + $0x518] sm:$0xff]  ;;  %v421_v44 = vld [vmem:[%s4216_s26 + $0x520] sm:$0xff] }
  0x5c   : > { %418 = vst [vmem:[%s4221_s23 + $0x150] sm:$0xff] %v417_v42  ;;  %420 = vst [vmem:[%s4221_s23 + $0x158] sm:$0xff] %v419_v43  ;;  %v423_v45 = vld [vmem:[%s4216_s26 + $0x528] sm:$0xff]  ;;  %v425_v46 = vld [vmem:[%s4216_s26 + $0x530] sm:$0xff] }
  0x5d   : > { %422 = vst [vmem:[%s4221_s23 + $0x160] sm:$0xff] %v421_v44  ;;  %v427_v47 = vld [vmem:[%s4216_s26 + $0x538] sm:$0xff]  ;;  %424 = vst [vmem:[%s4221_s23 + $0x168] sm:$0xff] %v423_v45  ;;  %v429_v48 = vld [vmem:[%s4216_s26 + $0x600] sm:$0xff] }
  0x5e   : > { %426 = vst [vmem:[%s4221_s23 + $0x170] sm:$0xff] %v425_v46  ;;  %428 = vst [vmem:[%s4221_s23 + $0x178] sm:$0xff] %v427_v47  ;;  %v431_v49 = vld [vmem:[%s4216_s26 + $0x608] sm:$0xff]  ;;  %v433_v50 = vld [vmem:[%s4216_s26 + $0x610] sm:$0xff] }
  0x5f   : > { %430 = vst [vmem:[%s4221_s23 + $0x180] sm:$0xff] %v429_v48  ;;  %432 = vst [vmem:[%s4221_s23 + $0x188] sm:$0xff] %v431_v49  ;;  %v435_v51 = vld [vmem:[%s4216_s26 + $0x618] sm:$0xff]  ;;  %v437_v52 = vld [vmem:[%s4216_s26 + $0x620] sm:$0xff] }
  0x60   : > { %434 = vst [vmem:[%s4221_s23 + $0x190] sm:$0xff] %v433_v50  ;;  %v439_v53 = vld [vmem:[%s4216_s26 + $0x628] sm:$0xff]  ;;  %436 = vst [vmem:[%s4221_s23 + $0x198] sm:$0xff] %v435_v51  ;;  %v441_v54 = vld [vmem:[%s4216_s26 + $0x630] sm:$0xff] }
  0x61   : > { %438 = vst [vmem:[%s4221_s23 + $0x1a0] sm:$0xff] %v437_v52  ;;  %440 = vst [vmem:[%s4221_s23 + $0x1a8] sm:$0xff] %v439_v53  ;;  %v443_v55 = vld [vmem:[%s4216_s26 + $0x638] sm:$0xff]  ;;  %v445_v56 = vld [vmem:[%s4216_s26 + $0x700] sm:$0xff] }
  0x62   : > { %442 = vst [vmem:[%s4221_s23 + $0x1b0] sm:$0xff] %v441_v54  ;;  %444 = vst [vmem:[%s4221_s23 + $0x1b8] sm:$0xff] %v443_v55  ;;  %v447_v57 = vld [vmem:[%s4216_s26 + $0x708] sm:$0xff]  ;;  %v449_v58 = vld [vmem:[%s4216_s26 + $0x710] sm:$0xff] }
  0x63   : > { %446 = vst [vmem:[%s4221_s23 + $0x1c0] sm:$0xff] %v445_v56  ;;  %v451_v59 = vld [vmem:[%s4216_s26 + $0x718] sm:$0xff]  ;;  %448 = vst [vmem:[%s4221_s23 + $0x1c8] sm:$0xff] %v447_v57  ;;  %v453_v60 = vld [vmem:[%s4216_s26 + $0x720] sm:$0xff] }
  0x64   : > { %450 = vst [vmem:[%s4221_s23 + $0x1d0] sm:$0xff] %v449_v58  ;;  %452 = vst [vmem:[%s4221_s23 + $0x1d8] sm:$0xff] %v451_v59  ;;  %v455_v61 = vld [vmem:[%s4216_s26 + $0x728] sm:$0xff]  ;;  %v457_v62 = vld [vmem:[%s4216_s26 + $0x730] sm:$0xff] }
  0x65   : > { %454 = vst [vmem:[%s4221_s23 + $0x1e0] sm:$0xff] %v453_v60  ;;  %456 = vst [vmem:[%s4221_s23 + $0x1e8] sm:$0xff] %v455_v61  ;;  %v459_v63 = vld [vmem:[%s4216_s26 + $0x738] sm:$0xff] }
  0x66   : > { %458 = vst [vmem:[%s4221_s23 + $0x1f0] sm:$0xff] %v457_v62  ;;  %460 = vst [vmem:[%s4221_s23 + $0x1f8] sm:$0xff] %v459_v63 }
  0x67 PF: > { %s467_s27 = sand.u32 1, %s4056_s11   ;;  %s3501_s22 = sshll.u32 %s4060_s12, 8 }
  0x68   : > { %s3256_s28 = sshll.u32 %s467_s27, 4  ;;  %s4353_s25 = scalar_lea.hbm %s5030_s4, %s3501_s22 }
  0x69   : > { %s471_s15 = scalar_lea.vmem [#allocation4], %s3256_s28  ;;  %s468_s21 = scalar_lea.sflag [#allocation5], %s467_s27 }
  0x6a   : > { %s479_s16 = sshll.u32 %s471_s15, 4  ;;  %s3992_s24 = scalar_lea.hbm %s4353_s25, 256  ;;  %s480_s16 = int_to_ptr.vmem [resolvable:$true] %s479_s16 }
  0x6b   : > { %p3993_p12 = scmp.ne.s32.totalorder %s4353_s25, %s3992_s24  ;;  %s3996_s23 = scalar_lea.hbm %s5030_s4, 1024 }
  0x6c   : > { %p3997_p2 = scmp.lt.s32.totalorder %s4353_s25, %s5030_s4  ;;  %p3998_p6 = scmp.lt.s32.totalorder %s3996_s23, %s3992_s24 }
  0x6d   : > { %p3994_p13 = pnand %p3993_p12, %p4156_p4 }
  0x6e   : > { %p3999_p7 = por %p3998_p6, %p3997_p2 }
  0x6f   : > { %p3995_p3 = pneg %p3994_p13 }
  0x71   : > { %p4000_p9 = pnand %p3999_p7, %p3995_p3 }
  0x73   : > { %4003 = shalt.err (!%p4000_p9)
}
  0x74   : > { %s4004_s22 = scalar_lea.vmem %s480_s16, 256  ;;  %s4067_s27 = smov [#allocation4]  }
  0x75   : > { %p4005_p11 = scmp.ne.s32.totalorder %s480_s16, %s4004_s22  ;;  %s4008_s28 = sshll.u32 %s4067_s27, 4  ;;  %s4009_s28 = int_to_ptr.vmem [resolvable:$false] %s4008_s28 }
  0x76   : > { %s4010_s30 = scalar_lea.vmem %s4009_s28, 512  ;;  %p4011_p8 = scmp.lt.s32.totalorder %s480_s16, %s4009_s28 }
  0x77   : > { %p4006_p0 = pnand %p4005_p11, %p4156_p4  ;;  %p4012_p1 = scmp.lt.s32.totalorder %s4010_s30, %s4004_s22 }
  0x79   : > { %p4007_p5 = pneg %p4006_p0  ;;  %p4013_p12 = por %p4012_p1, %p4011_p8 }
  0x7b   : > { %p4014_p13 = pnand %p4013_p12, %p4007_p5 }
  0x7d   : > { %4017 = shalt.err (!%p4014_p13)
}
  0x7e   : > { %3729 = dma.hbm_to_vmem [thread:$0]  (%p4156_p4), %s4353_s25, 256, %s480_s16, %s468_s21  }
  0x7f PF: > { %488 = sbr.rel (%p4170_p10) target bundleno = 1126 (0x466), region = 75  ;;  %s491_s3 = sand.u32 (!%p4170_p10), 1, %s4052_s10  }
  0x80   : > { %s3260_s15 = sshll.u32 (!%p4170_p10), %s491_s3, 9  ;;  %s3261_s24 = sshll.u32 (!%p4170_p10), %s491_s3, 4 }
  0x81   : > { %s4374_s26 = scalar_lea.vmem (!%p4170_p10), [#allocation3], %s3260_s15  ;;  %s498_s12 = scalar_lea.sflag (!%p4170_p10), [#allocation5], %s491_s3 }
  0x82   : > { %s4376_s23 = scalar_lea.vmem (!%p4170_p10), [#allocation4], %s3261_s24  ;;  %p5044_p3 = scmp.ne.s32.totalorder (!%p4170_p10), %s5040_s19, 0 }
  0x84   : > { %4035 = dma.done.wait (%p5044_p3), %s498_s12, 256  }
  0x85   : > { %4037 = vsyncadd (%p5044_p3), %s498_s12, 4294967040  ;;  %p5045_p4 = scmp.eq.s32.totalorder %s4141_s13, 0 }
  0x87   : > { %4039 = dma.done.wait (%p5045_p4), [#allocation7], 8256   ;;  %p5046_p10 = pmov %p5045_p4 }
  0x88   : > { %p5047_p2 = pmov %p5045_p4 }
  0x89   : > { %4041 = vsyncadd (%p5046_p10), [#allocation7], 4294959040 }
  0x8a   : > { %4043 = dma.done.wait (%p5047_p2), [#allocation10], 16   ;;  %p5048_p6 = pmov %p5047_p2 }
  0x8b   : > { %s3265_s18 = sshll.u32 %s4141_s13, 3  ;;  %p5049_p9 = scmp.ne.s32.totalorder %s4141_s13, 0 }
  0x8c   : > { %4045 = vsyncadd (%p5048_p6), [#allocation10], 4294967280  ;;  %p555_p7 = scmp.lt.s32.totalorder %s3265_s18, 31 }
  0x8d   : > { %564 = sbr.rel (%p5049_p9) target bundleno = 432 (0x1b0), region = 99 }
  0x8e   : > { %s5055_s18 = smov (!%p555_p7, %s3265_s18), 31 }
  0x8f   : > { %s3266_s20 = sshll.u32 %s5055_s18, 1 }
  0x90   : > { %s4394_s16 = scalar_lea.vmem %s5035_s9, %s3266_s20 }
  0x92   : > { %v630_v0 = vld [vmem:[%s5027_s1 + $0x8] sm:$0xff]  ;;  %v629_v1 = vld [vmem:[%s5027_s1] sm:$0xff]  ;;  %vm638_vm0 = vcmask 130048   ;;  %v567_v6 = vld [vmem:[%s5026_s0 + $0x10] sm:$0xff]  ;;  %vm1280_vm1 = vcmask 523264   ;;  %vm1352_vm2 = vcmask 516096  }
  0x93   : > { %3599 = vmatprep.subr.mxu0 %v630_v0  ;;  %3719 = vmatprep.subr.mxu1 %v630_v0  ;;  %v565_v2 = vld [vmem:[%s5026_s0] sm:$0xff]  ;;  %v566_v4 = vld [vmem:[%s5026_s0 + $0x8] sm:$0xff]  ;;  %v599_v7 = vld [vmem:[%s5026_s0 + $0x110] sm:$0xff] }
  0x94   : > { %3600 = vmatpush3.msra.mxu0 %v630_v0  ;;  %3721 = vmatpush3.msra.mxu1 %v630_v0  ;;  %v597_v3 = vld [vmem:[%s5026_s0 + $0x100] sm:$0xff]  ;;  %v598_v5 = vld [vmem:[%s5026_s0 + $0x108] sm:$0xff]  ;;  %v568_v8 = vld [vmem:[%s5026_s0 + $0x18] sm:$0xff] }
  0x95   : > { %3601 = vmatprep.subr.mxu0 %v629_v1  ;;  %3720 = vmatprep.subr.mxu1 %v629_v1  ;;  %v600_v9 = vld [vmem:[%s5026_s0 + $0x118] sm:$0xff]  ;;  %v569_v10 = vld [vmem:[%s5026_s0 + $0x20] sm:$0xff]  ;;  %v570_v12 = vld [vmem:[%s5026_s0 + $0x28] sm:$0xff] }
  0x96   : > { %3602 = vmatpush3.msra.mxu0 %v629_v1  ;;  %3722 = vmatpush3.msra.mxu1 %v629_v1  ;;  %v601_v11 = vld [vmem:[%s5026_s0 + $0x120] sm:$0xff]  ;;  %v602_v13 = vld [vmem:[%s5026_s0 + $0x128] sm:$0xff]  ;;  %v571_v14 = vld [vmem:[%s5026_s0 + $0x30] sm:$0xff] }
  0x97   : > { %3603 = vmatprep.mubr.msk.f32.mxu0 %vm638_vm0, %v565_v2  ;;  %3651 = vmatprep.mubr.msk.f32.mxu1 %vm638_vm0, %v597_v3  ;;  %v603_v15 = vld [vmem:[%s5026_s0 + $0x130] sm:$0xff]  ;;  %v572_v16 = vld [vmem:[%s5026_s0 + $0x38] sm:$0xff]  ;;  %v573_v18 = vld [vmem:[%s5026_s0 + $0x40] sm:$0xff] }
  0x98   : > { %3604 = vmatmul.mubr.msk.f32.vlgmr.msra.gmra.mxu0 %vm638_vm0, %v566_v4  ;;  %3652 = vmatmul.mubr.msk.f32.vlgmr.msra.gmra.mxu1 %vm638_vm0, %v598_v5  ;;  %v604_v17 = vld [vmem:[%s5026_s0 + $0x138] sm:$0xff]  ;;  %v605_v19 = vld [vmem:[%s5026_s0 + $0x140] sm:$0xff]  ;;  %v574_v20 = vld [vmem:[%s5026_s0 + $0x48] sm:$0xff] }
  0x99   : > { %3606 = vmatprep.mubr.msk.f32.mxu0 %vm638_vm0, %v567_v6  ;;  %3654 = vmatprep.mubr.msk.f32.mxu1 %vm638_vm0, %v599_v7  ;;  %v606_v21 = vld [vmem:[%s5026_s0 + $0x148] sm:$0xff]  ;;  %v575_v22 = vld [vmem:[%s5026_s0 + $0x50] sm:$0xff]  ;;  %v576_v24 = vld [vmem:[%s5026_s0 + $0x58] sm:$0xff] }
  0x9a   : > { %v607_v23 = vld [vmem:[%s5026_s0 + $0x150] sm:$0xff]  ;;  %v608_v25 = vld [vmem:[%s5026_s0 + $0x158] sm:$0xff]  ;;  %v577_v26 = vld [vmem:[%s5026_s0 + $0x60] sm:$0xff] }
  0x9b   : > { %v609_v27 = vld [vmem:[%s5026_s0 + $0x160] sm:$0xff]  ;;  %v578_v28 = vld [vmem:[%s5026_s0 + $0x68] sm:$0xff]  ;;  %v579_v30 = vld [vmem:[%s5026_s0 + $0x70] sm:$0xff] }
  0x9c   : > { %3607 = vmatmul.mubr.msk.f32.gmra.mxu0 %vm638_vm0, %v568_v8  ;;  %3655 = vmatmul.mubr.msk.f32.gmra.mxu1 %vm638_vm0, %v600_v9  ;;  %v610_v29 = vld [vmem:[%s5026_s0 + $0x168] sm:$0xff]  ;;  %v611_v31 = vld [vmem:[%s5026_s0 + $0x170] sm:$0xff]  ;;  %v580_v32 = vld [vmem:[%s5026_s0 + $0x78] sm:$0xff] }
  0x9d   : > { %3609 = vmatprep.mubr.msk.f32.mxu0 %vm638_vm0, %v569_v10  ;;  %3657 = vmatprep.mubr.msk.f32.mxu1 %vm638_vm0, %v601_v11  ;;  %v612_v33 = vld [vmem:[%s5026_s0 + $0x178] sm:$0xff]  ;;  %v581_v34 = vld [vmem:[%s5026_s0 + $0x80] sm:$0xff]  ;;  %v582_v36 = vld [vmem:[%s5026_s0 + $0x88] sm:$0xff] }
  0x9e   : > { %v613_v35 = vld [vmem:[%s5026_s0 + $0x180] sm:$0xff]  ;;  %v614_v37 = vld [vmem:[%s5026_s0 + $0x188] sm:$0xff]  ;;  %v583_v38 = vld [vmem:[%s5026_s0 + $0x90] sm:$0xff] }
  0x9f   : > { %v615_v39 = vld [vmem:[%s5026_s0 + $0x190] sm:$0xff]  ;;  %v584_v40 = vld [vmem:[%s5026_s0 + $0x98] sm:$0xff]  ;;  %v585_v42 = vld [vmem:[%s5026_s0 + $0xa0] sm:$0xff] }
  0xa0   : > { %3610 = vmatmul.mubr.msk.f32.gmra.mxu0 %vm638_vm0, %v570_v12  ;;  %3658 = vmatmul.mubr.msk.f32.gmra.mxu1 %vm638_vm0, %v602_v13  ;;  %v616_v41 = vld [vmem:[%s5026_s0 + $0x198] sm:$0xff]  ;;  %v617_v43 = vld [vmem:[%s5026_s0 + $0x1a0] sm:$0xff]  ;;  %v586_v44 = vld [vmem:[%s5026_s0 + $0xa8] sm:$0xff] }
  0xa1   : > { %3612 = vmatprep.mubr.msk.f32.mxu0 %vm638_vm0, %v571_v14  ;;  %3660 = vmatprep.mubr.msk.f32.mxu1 %vm638_vm0, %v603_v15  ;;  %v618_v45 = vld [vmem:[%s5026_s0 + $0x1a8] sm:$0xff]  ;;  %v587_v46 = vld [vmem:[%s5026_s0 + $0xb0] sm:$0xff]  ;;  %v588_v48 = vld [vmem:[%s5026_s0 + $0xb8] sm:$0xff] }
  0xa2   : > { %v619_v47 = vld [vmem:[%s5026_s0 + $0x1b0] sm:$0xff]  ;;  %v620_v49 = vld [vmem:[%s5026_s0 + $0x1b8] sm:$0xff]  ;;  %v589_v50 = vld [vmem:[%s5026_s0 + $0xc0] sm:$0xff] }
  0xa3   : > { %v621_v51 = vld [vmem:[%s5026_s0 + $0x1c0] sm:$0xff]  ;;  %v590_v52 = vld [vmem:[%s5026_s0 + $0xc8] sm:$0xff]  ;;  %v591_v54 = vld [vmem:[%s5026_s0 + $0xd0] sm:$0xff] }
  0xa4   : > { %3613 = vmatmul.mubr.msk.f32.gmra.mxu0 %vm638_vm0, %v572_v16  ;;  %3661 = vmatmul.mubr.msk.f32.gmra.mxu1 %vm638_vm0, %v604_v17  ;;  %v622_v53 = vld [vmem:[%s5026_s0 + $0x1c8] sm:$0xff]  ;;  %v623_v55 = vld [vmem:[%s5026_s0 + $0x1d0] sm:$0xff]  ;;  %v592_v56 = vld [vmem:[%s5026_s0 + $0xd8] sm:$0xff] }
  0xa5   : > { %3615 = vmatprep.mubr.msk.f32.mxu0 %vm638_vm0, %v573_v18  ;;  %3663 = vmatprep.mubr.msk.f32.mxu1 %vm638_vm0, %v605_v19  ;;  %v624_v57 = vld [vmem:[%s5026_s0 + $0x1d8] sm:$0xff]  ;;  %v593_v58 = vld [vmem:[%s5026_s0 + $0xe0] sm:$0xff]  ;;  %v594_v60 = vld [vmem:[%s5026_s0 + $0xe8] sm:$0xff] }
  0xa6   : > { %v625_v59 = vld [vmem:[%s5026_s0 + $0x1e0] sm:$0xff]  ;;  %v626_v61 = vld [vmem:[%s5026_s0 + $0x1e8] sm:$0xff]  ;;  %v595_v62 = vld [vmem:[%s5026_s0 + $0xf0] sm:$0xff] }
  0xa7   : > { %v627_v63 = vld [vmem:[%s5026_s0 + $0x1f0] sm:$0xff]  ;;  %v596_v0 = vld [vmem:[%s5026_s0 + $0xf8] sm:$0xff]  ;;  %v4663_v2 = vld [vmem:[%s5028_s2] ss:$0 sm:$0xff] }
  0xa8   : > { %3616 = vmatmul.mubr.msk.f32.gmra.mxu0 %vm638_vm0, %v574_v20  ;;  %3664 = vmatmul.mubr.msk.f32.gmra.mxu1 %vm638_vm0, %v606_v21  ;;  %v628_v1 = vld [vmem:[%s5026_s0 + $0x1f8] sm:$0xff] }
  0xa9   : > { %3618 = vmatprep.mubr.msk.f32.mxu0 %vm638_vm0, %v575_v22  ;;  %3666 = vmatprep.mubr.msk.f32.mxu1 %vm638_vm0, %v607_v23 }
  0xac   : > { %3619 = vmatmul.mubr.msk.f32.gmra.mxu0 %vm638_vm0, %v576_v24  ;;  %3667 = vmatmul.mubr.msk.f32.gmra.mxu1 %vm638_vm0, %v608_v25 }
  0xad   : > { %3621 = vmatprep.mubr.msk.f32.mxu0 %vm638_vm0, %v577_v26  ;;  %3669 = vmatprep.mubr.msk.f32.mxu1 %vm638_vm0, %v609_v27 }
  0xb0   : > { %3622 = vmatmul.mubr.msk.f32.gmra.mxu0 %vm638_vm0, %v578_v28  ;;  %3670 = vmatmul.mubr.msk.f32.gmra.mxu1 %vm638_vm0, %v610_v29 }
  0xb1   : > { %3624 = vmatprep.mubr.msk.f32.mxu0 %vm638_vm0, %v579_v30  ;;  %3672 = vmatprep.mubr.msk.f32.mxu1 %vm638_vm0, %v611_v31 }
  0xb4   : > { %3625 = vmatmul.mubr.msk.f32.gmra.mxu0 %vm638_vm0, %v580_v32  ;;  %3673 = vmatmul.mubr.msk.f32.gmra.mxu1 %vm638_vm0, %v612_v33 }
  0xb5   : > { %3627 = vmatprep.mubr.msk.f32.mxu0 %vm638_vm0, %v581_v34  ;;  %3675 = vmatprep.mubr.msk.f32.mxu1 %vm638_vm0, %v613_v35 }
  0xb8   : > { %3628 = vmatmul.mubr.msk.f32.gmra.mxu0 %vm638_vm0, %v582_v36  ;;  %3676 = vmatmul.mubr.msk.f32.gmra.mxu1 %vm638_vm0, %v614_v37 }
  0xb9   : > { %3630 = vmatprep.mubr.msk.f32.mxu0 %vm638_vm0, %v583_v38  ;;  %3678 = vmatprep.mubr.msk.f32.mxu1 %vm638_vm0, %v615_v39 }
  0xbc   : > { %3631 = vmatmul.mubr.msk.f32.gmra.mxu0 %vm638_vm0, %v584_v40  ;;  %3679 = vmatmul.mubr.msk.f32.gmra.mxu1 %vm638_vm0, %v616_v41 }
  0xbd   : > { %3633 = vmatprep.mubr.msk.f32.mxu0 %vm638_vm0, %v585_v42  ;;  %3681 = vmatprep.mubr.msk.f32.mxu1 %vm638_vm0, %v617_v43 }
  0xc0   : > { %3634 = vmatmul.mubr.msk.f32.gmra.mxu0 %vm638_vm0, %v586_v44  ;;  %3682 = vmatmul.mubr.msk.f32.gmra.mxu1 %vm638_vm0, %v618_v45 }
  0xc1   : > { %3636 = vmatprep.mubr.msk.f32.mxu0 %vm638_vm0, %v587_v46  ;;  %3684 = vmatprep.mubr.msk.f32.mxu1 %vm638_vm0, %v619_v47 }
  0xc4   : > { %3637 = vmatmul.mubr.msk.f32.gmra.mxu0 %vm638_vm0, %v588_v48  ;;  %3685 = vmatmul.mubr.msk.f32.gmra.mxu1 %vm638_vm0, %v620_v49 }
  0xc5   : > { %3639 = vmatprep.mubr.msk.f32.mxu0 %vm638_vm0, %v589_v50  ;;  %3687 = vmatprep.mubr.msk.f32.mxu1 %vm638_vm0, %v621_v51 }
  0xc8   : > { %3640 = vmatmul.mubr.msk.f32.gmra.mxu0 %vm638_vm0, %v590_v52  ;;  %3688 = vmatmul.mubr.msk.f32.gmra.mxu1 %vm638_vm0, %v622_v53 }
  0xc9   : > { %3642 = vmatprep.mubr.msk.f32.mxu0 %vm638_vm0, %v591_v54  ;;  %3690 = vmatprep.mubr.msk.f32.mxu1 %vm638_vm0, %v623_v55 }
  0xcc   : > { %3643 = vmatmul.mubr.msk.f32.gmra.mxu0 %vm638_vm0, %v592_v56  ;;  %3691 = vmatmul.mubr.msk.f32.gmra.mxu1 %vm638_vm0, %v624_v57 }
  0xcd   : > { %3645 = vmatprep.mubr.msk.f32.mxu0 %vm638_vm0, %v593_v58  ;;  %3693 = vmatprep.mubr.msk.f32.mxu1 %vm638_vm0, %v625_v59 }
  0xd0   : > { %3646 = vmatmul.mubr.msk.f32.gmra.mxu0 %vm638_vm0, %v594_v60  ;;  %3694 = vmatmul.mubr.msk.f32.gmra.mxu1 %vm638_vm0, %v626_v61 }
  0xd1   : > { %3648 = vmatprep.mubr.msk.f32.mxu0 %vm638_vm0, %v595_v62  ;;  %3696 = vmatprep.mubr.msk.f32.mxu1 %vm638_vm0, %v627_v63 }
  0xd4   : > { %3649 = vmatmul.mubr.msk.f32.gmra.mxu0 %vm638_vm0, %v596_v0  ;;  %3697 = vmatmul.mubr.msk.f32.gmra.mxu1 %vm638_vm0, %v628_v1 }
 0x158   : > { %v3605_v3 = vpop.f32.mrf.mxu0  ;;  %v3653_v4 = vpop.f32.mrf.mxu1 }
 0x159   : > { %v903_v5 = vadd.f32 %v3605_v3, %v4663_v2  ;;  %v1063_v6 = vadd.f32 %v3653_v4, %v4663_v2 }
 0x15a   : > { %v897_v7 = vpop.f32.mrf.mxu0  ;;  %v1057_v8 = vpop.f32.mrf.mxu1 }
 0x15b   : > { %v898_v9 = vadd.f32 %v4663_v2, %v897_v7  ;;  %v1058_v10 = vadd.f32 %v4663_v2, %v1057_v8  ;;  %v1217_v11 = vmax.f32 %v903_v5, 0.0  ;;  %v1249_v12 = vmax.f32 %v1063_v6, 0.0 }
 0x15c   : > { %v3608_v13 = vpop.f32.mrf.mxu0  ;;  %v3656_v14 = vpop.f32.mrf.mxu1 }
 0x15d   : > { %v1216_v15 = vmax.f32 %v898_v9, 0.0  ;;  %v1248_v16 = vmax.f32 %v1058_v10, 0.0  ;;  %v913_v17 = vadd.f32 %v3608_v13, %v4663_v2  ;;  %v1073_v18 = vadd.f32 %v3656_v14, %v4663_v2 }
 0x15e   : > { %v907_v19 = vpop.f32.mrf.mxu0  ;;  %v1067_v20 = vpop.f32.mrf.mxu1  ;;  %v1282_v25 = vsel %vm1280_vm1, %v1217_v11, 0.0  ;;  %v1355_v26 = vsel %vm1280_vm1, %v1249_v12, 0.0 }
 0x15f   : > { %v1281_v21 = vsel %vm1280_vm1, %v1216_v15, 0.0  ;;  %v1354_v22 = vsel %vm1280_vm1, %v1248_v16, 0.0  ;;  %v908_v23 = vadd.f32 %v4663_v2, %v907_v19  ;;  %v1068_v24 = vadd.f32 %v4663_v2, %v1067_v20 }
 0x160   : > { %v1219_v27 = vmax.f32 %v913_v17, 0.0  ;;  %v1251_v28 = vmax.f32 %v1073_v18, 0.0  ;;  %v3611_v29 = vpop.f32.mrf.mxu0  ;;  %v3659_v30 = vpop.f32.mrf.mxu1  ;;  %v1283_v35 = vadd.f32 %v1282_v25, %v1281_v21  ;;  %v1356_v36 = vadd.f32 %v1355_v26, %v1354_v22 }
 0x161   : > { %v1218_v31 = vmax.f32 %v908_v23, 0.0  ;;  %v1250_v32 = vmax.f32 %v1068_v24, 0.0  ;;  %v923_v33 = vadd.f32 %v3611_v29, %v4663_v2  ;;  %v1083_v34 = vadd.f32 %v3659_v30, %v4663_v2 }
 0x162   : > { %v917_v37 = vpop.f32.mrf.mxu0  ;;  %v1077_v38 = vpop.f32.mrf.mxu1  ;;  %v1286_v39 = vsel %vm1280_vm1, %v1219_v27, 0.0  ;;  %v1359_v40 = vsel %vm1280_vm1, %v1251_v28, 0.0 }
 0x163   : > { %v1284_v41 = vsel %vm1280_vm1, %v1218_v31, 0.0  ;;  %v1357_v42 = vsel %vm1280_vm1, %v1250_v32, 0.0  ;;  %v918_v45 = vadd.f32 %v4663_v2, %v917_v37  ;;  %v1078_v46 = vadd.f32 %v4663_v2, %v1077_v38 }
 0x164   : > { %v1285_v43 = vadd.f32 %v1284_v41, %v1283_v35  ;;  %v1358_v44 = vadd.f32 %v1357_v42, %v1356_v36  ;;  %v3614_v47 = vpop.f32.mrf.mxu0  ;;  %v3662_v48 = vpop.f32.mrf.mxu1  ;;  %v1221_v49 = vmax.f32 %v923_v33, 0.0  ;;  %v1253_v50 = vmax.f32 %v1083_v34, 0.0 }
 0x165   : > { %v933_v51 = vadd.f32 %v3614_v47, %v4663_v2  ;;  %v1093_v52 = vadd.f32 %v3662_v48, %v4663_v2  ;;  %v1220_v53 = vmax.f32 %v918_v45, 0.0  ;;  %v1252_v55 = vmax.f32 %v1078_v46, 0.0 }
 0x166   : > { %v1287_v54 = vadd.f32 %v1286_v39, %v1285_v43  ;;  %v1360_v56 = vadd.f32 %v1359_v40, %v1358_v44  ;;  %v927_v57 = vpop.f32.mrf.mxu0  ;;  %v1087_v58 = vpop.f32.mrf.mxu1  ;;  %v1290_v4 = vsel %vm1280_vm1, %v1221_v49, 0.0  ;;  %v1363_v5 = vsel %vm1280_vm1, %v1253_v50, 0.0 }
 0x167   : > { %v928_v59 = vadd.f32 %v4663_v2, %v927_v57  ;;  %v1088_v60 = vadd.f32 %v4663_v2, %v1087_v58  ;;  %v1288_v61 = vsel %vm1280_vm1, %v1220_v53, 0.0  ;;  %v1361_v62 = vsel %vm1280_vm1, %v1252_v55, 0.0 }
 0x168   : > { %v1223_v63 = vmax.f32 %v933_v51, 0.0  ;;  %v1255_v0 = vmax.f32 %v1093_v52, 0.0  ;;  %v3617_v1 = vpop.f32.mrf.mxu0  ;;  %v3665_v3 = vpop.f32.mrf.mxu1  ;;  %v1289_v6 = vadd.f32 %v1288_v61, %v1287_v54  ;;  %v1362_v7 = vadd.f32 %v1361_v62, %v1360_v56 }
 0x169   : > { %v1222_v8 = vmax.f32 %v928_v59, 0.0  ;;  %v1254_v9 = vmax.f32 %v1088_v60, 0.0  ;;  %v943_v10 = vadd.f32 %v3617_v1, %v4663_v2  ;;  %v1103_v11 = vadd.f32 %v3665_v3, %v4663_v2 }
 0x16a   : > { %v937_v12 = vpop.f32.mrf.mxu0  ;;  %v1097_v13 = vpop.f32.mrf.mxu1  ;;  %v1291_v14 = vadd.f32 %v1290_v4, %v1289_v6  ;;  %v1364_v15 = vadd.f32 %v1363_v5, %v1362_v7  ;;  %v1294_v18 = vsel %vm1280_vm1, %v1223_v63, 0.0  ;;  %v1367_v19 = vsel %vm1280_vm1, %v1255_v0, 0.0 }
 0x16b   : > { %v938_v16 = vadd.f32 %v4663_v2, %v937_v12  ;;  %v1098_v17 = vadd.f32 %v4663_v2, %v1097_v13  ;;  %v1292_v20 = vsel %vm1280_vm1, %v1222_v8, 0.0  ;;  %v1365_v21 = vsel %vm1280_vm1, %v1254_v9, 0.0 }
 0x16c   : > { %v3620_v22 = vpop.f32.mrf.mxu0  ;;  %v3668_v23 = vpop.f32.mrf.mxu1  ;;  %v1293_v24 = vadd.f32 %v1292_v20, %v1291_v14  ;;  %v1366_v25 = vadd.f32 %v1365_v21, %v1364_v15  ;;  %v1225_v28 = vmax.f32 %v943_v10, 0.0  ;;  %v1257_v29 = vmax.f32 %v1103_v11, 0.0 }
 0x16d   : > { %v1224_v26 = vmax.f32 %v938_v16, 0.0  ;;  %v1256_v27 = vmax.f32 %v1098_v17, 0.0  ;;  %v953_v30 = vadd.f32 %v3620_v22, %v4663_v2  ;;  %v1113_v31 = vadd.f32 %v3668_v23, %v4663_v2 }
 0x16e   : > { %v947_v32 = vpop.f32.mrf.mxu0  ;;  %v1107_v33 = vpop.f32.mrf.mxu1  ;;  %v1295_v34 = vadd.f32 %v1294_v18, %v1293_v24  ;;  %v1368_v36 = vadd.f32 %v1367_v19, %v1366_v25  ;;  %v1298_v48 = vsel %vm1280_vm1, %v1225_v28, 0.0  ;;  %v1371_v49 = vsel %vm1280_vm1, %v1257_v29, 0.0 }
 0x16f   : > { %v1296_v35 = vsel %vm1280_vm1, %v1224_v26, 0.0  ;;  %v1369_v37 = vsel %vm1280_vm1, %v1256_v27, 0.0  ;;  %v1227_v38 = vmax.f32 %v953_v30, 0.0  ;;  %v1259_v39 = vmax.f32 %v1113_v31, 0.0 }
 0x170   : > { %v948_v40 = vadd.f32 %v4663_v2, %v947_v32  ;;  %v1108_v41 = vadd.f32 %v4663_v2, %v1107_v33  ;;  %v3623_v42 = vpop.f32.mrf.mxu0  ;;  %v3671_v43 = vpop.f32.mrf.mxu1  ;;  %v1297_v44 = vadd.f32 %v1296_v35, %v1295_v34  ;;  %v1370_v45 = vadd.f32 %v1369_v37, %v1368_v36 }
 0x171   : > { %v963_v46 = vadd.f32 %v3623_v42, %v4663_v2  ;;  %v1123_v47 = vadd.f32 %v3671_v43, %v4663_v2  ;;  %v1302_v0 = vsel %vm1280_vm1, %v1227_v38, 0.0  ;;  %v1375_v1 = vsel %vm1280_vm1, %v1259_v39, 0.0 }
 0x172   : > { %v1226_v50 = vmax.f32 %v948_v40, 0.0  ;;  %v1258_v51 = vmax.f32 %v1108_v41, 0.0  ;;  %v957_v52 = vpop.f32.mrf.mxu0  ;;  %v1117_v53 = vpop.f32.mrf.mxu1  ;;  %v1299_v54 = vadd.f32 %v1298_v48, %v1297_v44  ;;  %v1372_v55 = vadd.f32 %v1371_v49, %v1370_v45 }
 0x173   : > { %v1229_v56 = vmax.f32 %v963_v46, 0.0  ;;  %v1261_v57 = vmax.f32 %v1123_v47, 0.0  ;;  %v958_v60 = vadd.f32 %v4663_v2, %v957_v52  ;;  %v1118_v61 = vadd.f32 %v4663_v2, %v1117_v53 }
 0x174   : > { %v1300_v58 = vsel %vm1280_vm1, %v1226_v50, 0.0  ;;  %v1373_v59 = vsel %vm1280_vm1, %v1258_v51, 0.0  ;;  %v3626_v62 = vpop.f32.mrf.mxu0  ;;  %v3674_v63 = vpop.f32.mrf.mxu1 }
 0x175   : > { %v1301_v3 = vadd.f32 %v1300_v58, %v1299_v54  ;;  %v1374_v4 = vadd.f32 %v1373_v59, %v1372_v55  ;;  %v1228_v5 = vmax.f32 %v958_v60, 0.0  ;;  %v1260_v6 = vmax.f32 %v1118_v61, 0.0 }
 0x176   : > { %v973_v7 = vadd.f32 %v3626_v62, %v4663_v2  ;;  %v1133_v8 = vadd.f32 %v3674_v63, %v4663_v2  ;;  %v967_v9 = vpop.f32.mrf.mxu0  ;;  %v1127_v10 = vpop.f32.mrf.mxu1  ;;  %v1306_v15 = vsel %vm1280_vm1, %v1229_v56, 0.0  ;;  %v1379_v16 = vsel %vm1280_vm1, %v1261_v57, 0.0 }
 0x177   : > { %v1303_v11 = vadd.f32 %v1302_v0, %v1301_v3  ;;  %v1376_v12 = vadd.f32 %v1375_v1, %v1374_v4  ;;  %v968_v13 = vadd.f32 %v4663_v2, %v967_v9  ;;  %v1128_v14 = vadd.f32 %v4663_v2, %v1127_v10 }
 0x178   : > { %v1304_v17 = vsel %vm1280_vm1, %v1228_v5, 0.0  ;;  %v1377_v18 = vsel %vm1280_vm1, %v1260_v6, 0.0  ;;  %v3629_v19 = vpop.f32.mrf.mxu0  ;;  %v3677_v20 = vpop.f32.mrf.mxu1  ;;  %v1231_v25 = vmax.f32 %v973_v7, 0.0  ;;  %v1263_v26 = vmax.f32 %v1133_v8, 0.0 }
 0x179   : > { %v1305_v21 = vadd.f32 %v1304_v17, %v1303_v11  ;;  %v1378_v22 = vadd.f32 %v1377_v18, %v1376_v12  ;;  %v1230_v23 = vmax.f32 %v968_v13, 0.0  ;;  %v1262_v24 = vmax.f32 %v1128_v14, 0.0 }
 0x17a   : > { %v983_v27 = vadd.f32 %v3629_v19, %v4663_v2  ;;  %v1143_v28 = vadd.f32 %v3677_v20, %v4663_v2  ;;  %v977_v29 = vpop.f32.mrf.mxu0  ;;  %v1137_v30 = vpop.f32.mrf.mxu1  ;;  %v1310_v45 = vsel %vm1280_vm1, %v1231_v25, 0.0  ;;  %v1383_v46 = vsel %vm1280_vm1, %v1263_v26, 0.0 }
 0x17b   : > { %v1307_v31 = vadd.f32 %v1306_v15, %v1305_v21  ;;  %v1308_v32 = vsel %vm1280_vm1, %v1230_v23, 0.0  ;;  %v1380_v33 = vadd.f32 %v1379_v16, %v1378_v22  ;;  %v1381_v34 = vsel %vm1280_vm1, %v1262_v24, 0.0 }
 0x17c   : > { %v1233_v35 = vmax.f32 %v983_v27, 0.0  ;;  %v1265_v36 = vmax.f32 %v1143_v28, 0.0  ;;  %v978_v37 = vadd.f32 %v4663_v2, %v977_v29  ;;  %v1138_v38 = vadd.f32 %v4663_v2, %v1137_v30  ;;  %v3632_v39 = vpop.f32.mrf.mxu0  ;;  %v3680_v40 = vpop.f32.mrf.mxu1 }
 0x17d   : > { %v1309_v41 = vadd.f32 %v1308_v32, %v1307_v31  ;;  %v1382_v42 = vadd.f32 %v1381_v34, %v1380_v33  ;;  %v993_v43 = vadd.f32 %v3632_v39, %v4663_v2  ;;  %v1153_v44 = vadd.f32 %v3680_v40, %v4663_v2 }
 0x17e   : > { %v1232_v47 = vmax.f32 %v978_v37, 0.0  ;;  %v1264_v48 = vmax.f32 %v1138_v38, 0.0  ;;  %v987_v49 = vpop.f32.mrf.mxu0  ;;  %v1147_v50 = vpop.f32.mrf.mxu1  ;;  %v1314_v61 = vsel %vm1280_vm1, %v1233_v35, 0.0  ;;  %v1387_v62 = vsel %vm1280_vm1, %v1265_v36, 0.0 }
 0x17f   : > { %v1311_v51 = vadd.f32 %v1310_v45, %v1309_v41  ;;  %v1384_v52 = vadd.f32 %v1383_v46, %v1382_v42  ;;  %v1235_v53 = vmax.f32 %v993_v43, 0.0  ;;  %v1267_v54 = vmax.f32 %v1153_v44, 0.0 }
 0x180   : > { %v1312_v55 = vsel %vm1280_vm1, %v1232_v47, 0.0  ;;  %v1385_v56 = vsel %vm1280_vm1, %v1264_v48, 0.0  ;;  %v988_v57 = vadd.f32 %v4663_v2, %v987_v49  ;;  %v1148_v58 = vadd.f32 %v4663_v2, %v1147_v50  ;;  %v3635_v59 = vpop.f32.mrf.mxu0  ;;  %v3683_v60 = vpop.f32.mrf.mxu1 }
 0x181   : > { %v1313_v63 = vadd.f32 %v1312_v55, %v1311_v51  ;;  %v1386_v0 = vadd.f32 %v1385_v56, %v1384_v52  ;;  %v1003_v4 = vadd.f32 %v3635_v59, %v4663_v2  ;;  %v1163_v5 = vadd.f32 %v3683_v60, %v4663_v2 }
 0x182   : > { %v1234_v1 = vmax.f32 %v988_v57, 0.0  ;;  %v1266_v3 = vmax.f32 %v1148_v58, 0.0  ;;  %v997_v6 = vpop.f32.mrf.mxu0  ;;  %v1157_v7 = vpop.f32.mrf.mxu1  ;;  %v1318_v12 = vsel %vm1280_vm1, %v1235_v53, 0.0  ;;  %v1391_v13 = vsel %vm1280_vm1, %v1267_v54, 0.0 }
 0x183   : > { %v1315_v8 = vadd.f32 %v1314_v61, %v1313_v63  ;;  %v1388_v9 = vadd.f32 %v1387_v62, %v1386_v0  ;;  %v998_v10 = vadd.f32 %v4663_v2, %v997_v6  ;;  %v1158_v11 = vadd.f32 %v4663_v2, %v1157_v7 }
 0x184   : > { %v1316_v14 = vsel %vm1280_vm1, %v1234_v1, 0.0  ;;  %v1389_v15 = vsel %vm1280_vm1, %v1266_v3, 0.0  ;;  %v3638_v16 = vpop.f32.mrf.mxu0  ;;  %v3686_v17 = vpop.f32.mrf.mxu1  ;;  %v1237_v22 = vmax.f32 %v1003_v4, 0.0  ;;  %v1269_v23 = vmax.f32 %v1163_v5, 0.0 }
 0x185   : > { %v1317_v18 = vadd.f32 %v1316_v14, %v1315_v8  ;;  %v1390_v19 = vadd.f32 %v1389_v15, %v1388_v9  ;;  %v1236_v20 = vmax.f32 %v998_v10, 0.0  ;;  %v1268_v21 = vmax.f32 %v1158_v11, 0.0 }
 0x186   : > { %v1013_v24 = vadd.f32 %v3638_v16, %v4663_v2  ;;  %v1173_v25 = vadd.f32 %v3686_v17, %v4663_v2  ;;  %v1007_v26 = vpop.f32.mrf.mxu0  ;;  %v1167_v27 = vpop.f32.mrf.mxu1  ;;  %v1322_v42 = vsel %vm1280_vm1, %v1237_v22, 0.0  ;;  %v1395_v43 = vsel %vm1280_vm1, %v1269_v23, 0.0 }
 0x187   : > { %v1319_v28 = vadd.f32 %v1318_v12, %v1317_v18  ;;  %v1320_v29 = vsel %vm1280_vm1, %v1236_v20, 0.0  ;;  %v1392_v30 = vadd.f32 %v1391_v13, %v1390_v19  ;;  %v1393_v31 = vsel %vm1280_vm1, %v1268_v21, 0.0 }
 0x188   : > { %v1239_v32 = vmax.f32 %v1013_v24, 0.0  ;;  %v1271_v33 = vmax.f32 %v1173_v25, 0.0  ;;  %v1008_v34 = vadd.f32 %v4663_v2, %v1007_v26  ;;  %v1168_v35 = vadd.f32 %v4663_v2, %v1167_v27  ;;  %v3641_v36 = vpop.f32.mrf.mxu0  ;;  %v3689_v37 = vpop.f32.mrf.mxu1 }
 0x189   : > { %v1321_v38 = vadd.f32 %v1320_v29, %v1319_v28  ;;  %v1394_v39 = vadd.f32 %v1393_v31, %v1392_v30  ;;  %v1023_v40 = vadd.f32 %v3641_v36, %v4663_v2  ;;  %v1183_v41 = vadd.f32 %v3689_v37, %v4663_v2 }
 0x18a   : > { %v1238_v44 = vmax.f32 %v1008_v34, 0.0  ;;  %v1270_v45 = vmax.f32 %v1168_v35, 0.0  ;;  %v1017_v46 = vpop.f32.mrf.mxu0  ;;  %v1177_v47 = vpop.f32.mrf.mxu1  ;;  %v1326_v48 = vsel %vm1280_vm1, %v1239_v32, 0.0  ;;  %v1399_v49 = vsel %vm1280_vm1, %v1271_v33, 0.0 }
 0x18b   : > { %v1323_v50 = vadd.f32 %v1322_v42, %v1321_v38  ;;  %v1396_v51 = vadd.f32 %v1395_v43, %v1394_v39  ;;  %v1018_v54 = vadd.f32 %v4663_v2, %v1017_v46  ;;  %v1178_v55 = vadd.f32 %v4663_v2, %v1177_v47 }
 0x18c   : > { %v1324_v52 = vsel %vm1280_vm1, %v1238_v44, 0.0  ;;  %v1397_v53 = vsel %vm1280_vm1, %v1270_v45, 0.0  ;;  %v3644_v56 = vpop.f32.mrf.mxu0  ;;  %v3692_v57 = vpop.f32.mrf.mxu1  ;;  %v1241_v60 = vmax.f32 %v1023_v40, 0.0  ;;  %v1273_v61 = vmax.f32 %v1183_v41, 0.0 }
 0x18d   : > { %v1325_v58 = vadd.f32 %v1324_v52, %v1323_v50  ;;  %v1398_v59 = vadd.f32 %v1397_v53, %v1396_v51  ;;  %v1240_v62 = vmax.f32 %v1018_v54, 0.0  ;;  %v1272_v63 = vmax.f32 %v1178_v55, 0.0 }
 0x18e   : > { %v1033_v0 = vadd.f32 %v3644_v56, %v4663_v2  ;;  %v1193_v1 = vadd.f32 %v3692_v57, %v4663_v2  ;;  %v1027_v3 = vpop.f32.mrf.mxu0  ;;  %v1187_v4 = vpop.f32.mrf.mxu1  ;;  %v1330_v19 = vsel %vm1280_vm1, %v1241_v60, 0.0  ;;  %v1403_v20 = vsel %vm1280_vm1, %v1273_v61, 0.0 }
 0x18f   : > { %v1327_v5 = vadd.f32 %v1326_v48, %v1325_v58  ;;  %v1400_v6 = vadd.f32 %v1399_v49, %v1398_v59  ;;  %v1028_v7 = vadd.f32 %v4663_v2, %v1027_v3  ;;  %v1188_v8 = vadd.f32 %v4663_v2, %v1187_v4 }
 0x190   : > { %v1328_v9 = vsel %vm1280_vm1, %v1240_v62, 0.0  ;;  %v1401_v10 = vsel %vm1280_vm1, %v1272_v63, 0.0  ;;  %v1243_v11 = vmax.f32 %v1033_v0, 0.0  ;;  %v1275_v12 = vmax.f32 %v1193_v1, 0.0  ;;  %v3647_v13 = vpop.f32.mrf.mxu0  ;;  %v3695_v14 = vpop.f32.mrf.mxu1 }
 0x191   : > { %v1329_v15 = vadd.f32 %v1328_v9, %v1327_v5  ;;  %v1402_v16 = vadd.f32 %v1401_v10, %v1400_v6  ;;  %v1242_v17 = vmax.f32 %v1028_v7, 0.0  ;;  %v1274_v18 = vmax.f32 %v1188_v8, 0.0 }
 0x192   : > { %v1043_v21 = vadd.f32 %v3647_v13, %v4663_v2  ;;  %v1203_v22 = vadd.f32 %v3695_v14, %v4663_v2  ;;  %v1037_v23 = vpop.f32.mrf.mxu0  ;;  %v1197_v24 = vpop.f32.mrf.mxu1  ;;  %v1334_v29 = vsel %vm1280_vm1, %v1243_v11, 0.0  ;;  %v1407_v30 = vsel %vm1280_vm1, %v1275_v12, 0.0 }
 0x193   : > { %v1331_v25 = vadd.f32 %v1330_v19, %v1329_v15  ;;  %v1332_v26 = vsel %vm1280_vm1, %v1242_v17, 0.0  ;;  %v1404_v27 = vadd.f32 %v1403_v20, %v1402_v16  ;;  %v1405_v28 = vsel %vm1280_vm1, %v1274_v18, 0.0 }
 0x194   : > { %v1038_v31 = vadd.f32 %v4663_v2, %v1037_v23  ;;  %v1198_v32 = vadd.f32 %v4663_v2, %v1197_v24  ;;  %v3650_v33 = vpop.f32.mrf.mxu0  ;;  %v3698_v34 = vpop.f32.mrf.mxu1  ;;  %v1245_v37 = vmax.f32 %v1043_v21, 0.0  ;;  %v1277_v38 = vmax.f32 %v1203_v22, 0.0 }
 0x195   : > { %v1333_v35 = vadd.f32 %v1332_v26, %v1331_v25  ;;  %v1406_v36 = vadd.f32 %v1405_v28, %v1404_v27  ;;  %v1053_v41 = vadd.f32 %v3650_v33, %v4663_v2  ;;  %v1213_v42 = vadd.f32 %v3698_v34, %v4663_v2 }
 0x196   : > { %v1244_v39 = vmax.f32 %v1038_v31, 0.0  ;;  %v1276_v40 = vmax.f32 %v1198_v32, 0.0  ;;  %v1047_v43 = vpop.f32.mrf.mxu0  ;;  %v1207_v44 = vpop.f32.mrf.mxu1  ;;  %v1338_v51 = vsel %vm1280_vm1, %v1245_v37, 0.0  ;;  %v1411_v52 = vsel %vm1280_vm1, %v1277_v38, 0.0 }
 0x197   : > { %v1335_v45 = vadd.f32 %v1334_v29, %v1333_v35  ;;  %v1408_v46 = vadd.f32 %v1407_v30, %v1406_v36  ;;  %v1048_v49 = vadd.f32 %v4663_v2, %v1047_v43  ;;  %v1208_v50 = vadd.f32 %v4663_v2, %v1207_v44 }
 0x198   : > { %v1336_v47 = vsel %vm1280_vm1, %v1244_v39, 0.0  ;;  %v1409_v48 = vsel %vm1280_vm1, %v1276_v40, 0.0  ;;  %v1247_v55 = vmax.f32 %v1053_v41, 0.0  ;;  %v1279_v56 = vmax.f32 %v1213_v42, 0.0 }
 0x199   : > { %v1337_v53 = vadd.f32 %v1336_v47, %v1335_v45  ;;  %v1410_v54 = vadd.f32 %v1409_v48, %v1408_v46  ;;  %v1246_v57 = vmax.f32 %v1048_v49, 0.0  ;;  %v1278_v58 = vmax.f32 %v1208_v50, 0.0 }
 0x19a   : > { %v1342_v2 = vsel %vm1280_vm1, %v1247_v55, 0.0  ;;  %v1415_v1 = vsel %vm1280_vm1, %v1279_v56, 0.0 }
 0x19b   : > { %v1339_v59 = vadd.f32 %v1338_v51, %v1337_v53  ;;  %v1412_v60 = vadd.f32 %v1411_v52, %v1410_v54  ;;  %v1340_v61 = vsel %vm1280_vm1, %v1246_v57, 0.0  ;;  %v1413_v62 = vsel %vm1280_vm1, %v1278_v58, 0.0 }
 0x19d   : > { %v1341_v63 = vadd.f32 %v1340_v61, %v1339_v59  ;;  %v1414_v0 = vadd.f32 %v1413_v62, %v1412_v60 }
 0x19f   : > { %v1343_v3 = vadd.f32 %v1342_v2, %v1341_v63  ;;  %v1416_v4 = vadd.f32 %v1415_v1, %v1414_v0 }
 0x1a1   : > { %v1344_v5 = vrot.slane %v1343_v3, 4  ;;  %v1417_v6 = vrot.slane %v1416_v4, 4 }
 0x1a3   : > { %v1345_v7 = vadd.f32 %v1344_v5, %v1343_v3  ;;  %v1418_v8 = vadd.f32 %v1417_v6, %v1416_v4 }
 0x1a5   : > { %v1346_v9 = vrot.slane %v1345_v7, 2  ;;  %v1419_v10 = vrot.slane %v1418_v8, 2 }
 0x1a7   : > { %v1347_v11 = vadd.f32 %v1346_v9, %v1345_v7  ;;  %v1420_v12 = vadd.f32 %v1419_v10, %v1418_v8 }
 0x1a9   : > { %v1348_v13 = vrot.slane %v1347_v11, 1  ;;  %v1421_v14 = vrot.slane %v1420_v12, 1 }
 0x1ab   : > { %v1349_v15 = vadd.f32 %v1348_v13, %v1347_v11  ;;  %v1422_v16 = vadd.f32 %v1421_v14, %v1420_v12 }
 0x1ad   : > { %v1351_v17 = vmul.f32 0.00390625, %v1349_v15  ;;  %v1423_v18 = vmul.f32 0.00390625, %v1422_v16 }
 0x1af   : > { %1353 = vst.msk [vmem:[#allocation2] sm:$0x1] %vm1352_vm2, %v1351_v17  ;;  %1424 = vst.msk [vmem:[#allocation2 + $0x1] sm:$0x1] %vm1352_vm2, %v1423_v18 }
 0x1b0 PF: > { %v1475_v19 = vld [vmem:[%s4374_s26 + $0x180] sm:$0xff]  ;;  %v1476_v21 = vld [vmem:[%s4374_s26 + $0x188] sm:$0xff]  ;;  %v4068_v27 = vmov 0   ;;  %v1477_v50 = vld [vmem:[%s4374_s26 + $0x190] sm:$0xff]  ;;  %vm1895_vm3 = vcmask 523264   ;;  %vm2279_vm4 = vcmask 1041408  }
 0x1b1   : > { %v1483_v20 = vld [vmem:[%s4374_s26 + $0x1c0] sm:$0xff]  ;;  %v1484_v23 = vld [vmem:[%s4374_s26 + $0x1c8] sm:$0xff]  ;;  %1931 = vmatprep.mubr.bf16.mxu0 %v4068_v27  ;;  %1972 = vmatprep.mubr.bf16.mxu1 %v4068_v27  ;;  %v1485_v51 = vld [vmem:[%s4374_s26 + $0x1d0] sm:$0xff]  ;;  %vm2282_vm5 = vcmask 1043456   ;;  %vm2285_vm6 = vcmask 1045504   ;;  %vm4070_vm7 = vmmov 0  }
 0x1b2   : > { %v3382_v22 = vcombine.high %v1475_v19, %v1483_v20  ;;  %v3381_v24 = vcombine.low %v1475_v19, %v1483_v20  ;;  %v1459_v25 = vld [vmem:[%s4374_s26 + $0x100] sm:$0xff]  ;;  %v3384_v28 = vcombine.high %v1476_v21, %v1484_v23  ;;  %v3383_v29 = vcombine.low %v1476_v21, %v1484_v23  ;;  %v1460_v31 = vld [vmem:[%s4374_s26 + $0x108] sm:$0xff]  ;;  %v1478_v52 = vld [vmem:[%s4374_s26 + $0x198] sm:$0xff] }
 0x1b3   : > { %v1467_v26 = vld [vmem:[%s4374_s26 + $0x140] sm:$0xff]  ;;  %v1468_v32 = vld [vmem:[%s4374_s26 + $0x148] sm:$0xff]  ;;  %v1486_v53 = vld [vmem:[%s4374_s26 + $0x1d8] sm:$0xff]  ;;  %v3386_v57 = vcombine.high %v1477_v50, %v1485_v51  ;;  %v3385_v0 = vcombine.low %v1477_v50, %v1485_v51 }
 0x1b4   : > { %v3366_v30 = vcombine.high %v1459_v25, %v1467_v26  ;;  %v1443_v33 = vld [vmem:[%s4374_s26 + $0x80] sm:$0xff]  ;;  %1907 = vmatprep.subr.bf16.mxu0 %v3382_v22  ;;  %v3368_v34 = vcombine.high %v1460_v31, %v1468_v32  ;;  %v1444_v36 = vld [vmem:[%s4374_s26 + $0x88] sm:$0xff]  ;;  %1948 = vmatprep.subr.bf16.mxu1 %v3384_v28  ;;  %v3365_v38 = vcombine.low %v1459_v25, %v1467_v26  ;;  %v1461_v59 = vld [vmem:[%s4374_s26 + $0x110] sm:$0xff] }
 0x1b5   : > { %v1451_v35 = vld [vmem:[%s4374_s26 + $0xc0] sm:$0xff]  ;;  %v1452_v37 = vld [vmem:[%s4374_s26 + $0xc8] sm:$0xff]  ;;  %1908 = vmatpush1.bf16.msra.mxu0 %v3381_v24  ;;  %1949 = vmatpush1.bf16.msra.mxu1 %v3383_v29  ;;  %v3367_v39 = vcombine.low %v1460_v31, %v1468_v32  ;;  %v3388_v58 = vcombine.high %v1478_v52, %v1486_v53  ;;  %v1469_v60 = vld [vmem:[%s4374_s26 + $0x150] sm:$0xff]  ;;  %v3387_v2 = vcombine.low %v1478_v52, %v1486_v53 }
 0x1b6   : > { %1909 = vmatprep.subr.bf16.mxu0 %v3366_v30  ;;  %v3350_v40 = vcombine.high %v1443_v33, %v1451_v35  ;;  %1950 = vmatprep.subr.bf16.mxu1 %v3368_v34  ;;  %v3352_v41 = vcombine.high %v1444_v36, %v1452_v37  ;;  %v1427_v42 = vld [vmem:[%s4374_s26] sm:$0xff]  ;;  %v1428_v44 = vld [vmem:[%s4374_s26 + $0x8] sm:$0xff]  ;;  %v3349_v46 = vcombine.low %v1443_v33, %v1451_v35  ;;  %v1425_v55 = vld [vmem:[#allocation2] sm:$0x3] }
 0x1b7   : > { %v1435_v43 = vld [vmem:[%s4374_s26 + $0x40] sm:$0xff]  ;;  %v1436_v45 = vld [vmem:[%s4374_s26 + $0x48] sm:$0xff]  ;;  %v3351_v47 = vcombine.low %v1444_v36, %v1452_v37  ;;  %v4817_v61 = vpack.c.bf16 %v1425_v55, %v1425_v55  ;;  %v1462_v62 = vld [vmem:[%s4374_s26 + $0x118] sm:$0xff]  ;;  %v3370_v1 = vcombine.high %v1461_v59, %v1469_v60  ;;  %v3369_v8 = vcombine.low %v1461_v59, %v1469_v60 }
 0x1b8   : > { %v3334_v48 = vcombine.high %v1427_v42, %v1435_v43  ;;  %v3336_v49 = vcombine.high %v1428_v44, %v1436_v45  ;;  %v3333_v54 = vcombine.low %v1427_v42, %v1435_v43  ;;  %v3335_v56 = vcombine.low %v1428_v44, %v1436_v45  ;;  %v1470_v63 = vld [vmem:[%s4374_s26 + $0x158] sm:$0xff]  ;;  %v1445_v4 = vld [vmem:[%s4374_s26 + $0x90] sm:$0xff]  ;;  %v1479_v17 = vld [vmem:[%s4374_s26 + $0x1a0] sm:$0xff] }
 0x1b9   : > { %1910 = vmatpush1.bf16.msra.mxu0 %v3365_v38  ;;  %1951 = vmatpush1.bf16.msra.mxu1 %v3367_v39  ;;  %v3372_v3 = vcombine.high %v1462_v62, %v1470_v63  ;;  %v1453_v5 = vld [vmem:[%s4374_s26 + $0xd0] sm:$0xff]  ;;  %v1446_v6 = vld [vmem:[%s4374_s26 + $0x98] sm:$0xff]  ;;  %v3371_v9 = vcombine.low %v1462_v62, %v1470_v63  ;;  %v1487_v18 = vld [vmem:[%s4374_s26 + $0x1e0] sm:$0xff] }
 0x1ba   : > { %1911 = vmatprep.subr.bf16.mxu0 %v3350_v40  ;;  %1952 = vmatprep.subr.bf16.mxu1 %v3352_v41  ;;  %v1454_v7 = vld [vmem:[%s4374_s26 + $0xd8] sm:$0xff]  ;;  %v3354_v10 = vcombine.high %v1445_v4, %v1453_v5  ;;  %v1429_v11 = vld [vmem:[%s4374_s26 + $0x10] sm:$0xff]  ;;  %v3353_v16 = vcombine.low %v1445_v4, %v1453_v5  ;;  %v1480_v21 = vld [vmem:[%s4374_s26 + $0x1a8] sm:$0xff]  ;;  %v3390_v29 = vcombine.high %v1479_v17, %v1487_v18 }
 0x1bb   : > { %v3356_v12 = vcombine.high %v1446_v6, %v1454_v7  ;;  %v1437_v13 = vld [vmem:[%s4374_s26 + $0x50] sm:$0xff]  ;;  %v1430_v14 = vld [vmem:[%s4374_s26 + $0x18] sm:$0xff]  ;;  %v3355_v19 = vcombine.low %v1446_v6, %v1454_v7  ;;  %v1488_v22 = vld [vmem:[%s4374_s26 + $0x1e8] sm:$0xff]  ;;  %v3389_v33 = vcombine.low %v1479_v17, %v1487_v18 }
 0x1bc   : > { %v1438_v15 = vld [vmem:[%s4374_s26 + $0x58] sm:$0xff]  ;;  %v3338_v20 = vcombine.high %v1429_v11, %v1437_v13  ;;  %v3337_v24 = vcombine.low %v1429_v11, %v1437_v13  ;;  %v1463_v25 = vld [vmem:[%s4374_s26 + $0x120] sm:$0xff]  ;;  %v1464_v30 = vld [vmem:[%s4374_s26 + $0x128] sm:$0xff]  ;;  %v3392_v32 = vcombine.high %v1480_v21, %v1488_v22  ;;  %v3391_v36 = vcombine.low %v1480_v21, %v1488_v22 }
 0x1bd   : > { %1912 = vmatpush1.bf16.msra.mxu0 %v3349_v46  ;;  %1953 = vmatpush1.bf16.msra.mxu1 %v3351_v47  ;;  %v3340_v23 = vcombine.high %v1430_v14, %v1438_v15  ;;  %v1471_v26 = vld [vmem:[%s4374_s26 + $0x160] sm:$0xff]  ;;  %v3339_v28 = vcombine.low %v1430_v14, %v1438_v15  ;;  %v1472_v31 = vld [vmem:[%s4374_s26 + $0x168] sm:$0xff]  ;;  %v1481_v50 = vld [vmem:[%s4374_s26 + $0x1b0] sm:$0xff] }
 0x1be   : > { %1913 = vmatprep.subr.bf16.mxu0 %v3334_v48  ;;  %1954 = vmatprep.subr.bf16.mxu1 %v3336_v49  ;;  %v1447_v34 = vld [vmem:[%s4374_s26 + $0xa0] sm:$0xff]  ;;  %v3374_v37 = vcombine.high %v1463_v25, %v1471_v26  ;;  %v1448_v38 = vld [vmem:[%s4374_s26 + $0xa8] sm:$0xff]  ;;  %v3376_v40 = vcombine.high %v1464_v30, %v1472_v31  ;;  %v3373_v41 = vcombine.low %v1463_v25, %v1471_v26  ;;  %v1489_v51 = vld [vmem:[%s4374_s26 + $0x1f0] sm:$0xff] }
 0x1bf   : > { %v1455_v35 = vld [vmem:[%s4374_s26 + $0xe0] sm:$0xff]  ;;  %v1456_v39 = vld [vmem:[%s4374_s26 + $0xe8] sm:$0xff]  ;;  %v3375_v44 = vcombine.low %v1464_v30, %v1472_v31  ;;  %v1490_v55 = vld [vmem:[%s4374_s26 + $0x1f8] sm:$0xff]  ;;  %v3394_v62 = vcombine.high %v1481_v50, %v1489_v51 }
 0x1c0   : > { %v1431_v42 = vld [vmem:[%s4374_s26 + $0x20] sm:$0xff]  ;;  %v3358_v45 = vcombine.high %v1447_v34, %v1455_v35  ;;  %v1432_v46 = vld [vmem:[%s4374_s26 + $0x28] sm:$0xff]  ;;  %v3360_v48 = vcombine.high %v1448_v38, %v1456_v39  ;;  %v3357_v49 = vcombine.low %v1447_v34, %v1455_v35  ;;  %v3359_v52 = vcombine.low %v1448_v38, %v1456_v39  ;;  %v1473_v59 = vld [vmem:[%s4374_s26 + $0x170] sm:$0xff] }
 0x1c1   : > { %1914 = vmatpush1.bf16.msra.mxu0 %v3333_v54  ;;  %1955 = vmatpush1.bf16.msra.mxu1 %v3335_v56  ;;  %v1439_v43 = vld [vmem:[%s4374_s26 + $0x60] sm:$0xff]  ;;  %v1440_v47 = vld [vmem:[%s4374_s26 + $0x68] sm:$0xff]  ;;  %v1482_v54 = vld [vmem:[%s4374_s26 + $0x1b8] sm:$0xff] }
 0x1c2   : > { %1989 = vmatprep.subr.bf16.mxu0 %v3386_v57  ;;  %2030 = vmatprep.subr.bf16.mxu1 %v3388_v58  ;;  %v3342_v53 = vcombine.high %v1431_v42, %v1439_v43  ;;  %v3344_v56 = vcombine.high %v1432_v46, %v1440_v47  ;;  %v3341_v57 = vcombine.low %v1431_v42, %v1439_v43  ;;  %v1465_v58 = vld [vmem:[%s4374_s26 + $0x130] sm:$0xff]  ;;  %v1466_v63 = vld [vmem:[%s4374_s26 + $0x138] sm:$0xff] }
 0x1c3   : > { %v3343_v60 = vcombine.low %v1432_v46, %v1440_v47  ;;  %v1457_v4 = vld [vmem:[%s4374_s26 + $0xf0] sm:$0xff]  ;;  %v3395_v5 = vcombine.low %v1482_v54, %v1490_v55  ;;  %v3378_v6 = vcombine.high %v1465_v58, %v1473_v59  ;;  %v1450_v7 = vld [vmem:[%s4374_s26 + $0xb8] sm:$0xff] }
 0x1c4   : > { %3397 = vmatmul.mubr.msk.bf16.vlgmr.msra.gmra.mxu0 %vm1895_vm3, %v4817_v61  ;;  %3398 = vmatmul.mubr.msk.bf16.vlgmr.msra.gmra.mxu1 %vm1895_vm3, %v4817_v61  ;;  %v1433_v11 = vld [vmem:[%s4374_s26 + $0x30] sm:$0xff]  ;;  %v1434_v15 = vld [vmem:[%s4374_s26 + $0x38] sm:$0xff] }
 0x1c5   : > { %1990 = vmatpush1.bf16.msra.mxu0 %v3385_v0  ;;  %2031 = vmatpush1.bf16.msra.mxu1 %v3387_v2  ;;  %v1474_v0 = vld [vmem:[%s4374_s26 + $0x178] sm:$0xff]  ;;  %v3396_v2 = vcombine.high %v1482_v54, %v1490_v55  ;;  %v3794_v26 = vld [vmem:[#allocation6 + $0xe0] ss:$16 sps:$4 sm:$0xff]   ;;  %v3820_v39 = vld [vmem:[#allocation6 + $0x64] ss:$16 sps:$4 sm:$0xff]  }
 0x1c6   : > { %1991 = vmatprep.subr.bf16.mxu0 %v3370_v1  ;;  %2032 = vmatprep.subr.bf16.mxu1 %v3372_v3  ;;  %v3393_v1 = vcombine.low %v1481_v50, %v1489_v51  ;;  %v1449_v3 = vld [vmem:[%s4374_s26 + $0xb0] sm:$0xff]  ;;  %v3379_v13 = vcombine.low %v1466_v63, %v1474_v0  ;;  %v3799_v25 = vld [vmem:[#allocation6 + $0xec] ss:$16 sps:$4 sm:$0xff]   ;;  %v3803_v31 = vld [vmem:[#allocation6 + $0xc8] ss:$16 sps:$4 sm:$0xff]  }
 0x1c7   : > { %2013 = vmatprep.mubr.bf16.mxu0 %v4068_v27  ;;  %2054 = vmatprep.mubr.bf16.mxu1 %v4068_v27  ;;  %v3362_v14 = vcombine.high %v1449_v3, %v1457_v4  ;;  %v3361_v18 = vcombine.low %v1449_v3, %v1457_v4  ;;  %v3800_v30 = vld [vmem:[#allocation6 + $0xc0] ss:$16 sps:$4 sm:$0xff]   ;;  %v3809_v35 = vld [vmem:[#allocation6 + $0xa8] ss:$16 sps:$4 sm:$0xff]   ;;  %v3826_v43 = vld [vmem:[#allocation6 + $0x44] ss:$16 sps:$4 sm:$0xff]  }
 0x1c8   : > { %v3806_v34 = vld [vmem:[#allocation6 + $0xa0] ss:$16 sps:$4 sm:$0xff]   ;;  %v3815_v38 = vld [vmem:[#allocation6 + $0x88] ss:$16 sps:$4 sm:$0xff]   ;;  %v3832_v47 = vld [vmem:[#allocation6 + $0x24] ss:$16 sps:$4 sm:$0xff]  }
 0x1c9   : > { %1992 = vmatpush1.bf16.msra.mxu0 %v3369_v8  ;;  %2033 = vmatpush1.bf16.msra.mxu1 %v3371_v9  ;;  %v1458_v8 = vld [vmem:[%s4374_s26 + $0xf8] sm:$0xff]  ;;  %v3380_v9 = vcombine.high %v1466_v63, %v1474_v0  ;;  %v3836_v51 = vld [vmem:[#allocation6] ss:$16 sps:$4 sm:$0xff]   ;;  %v3844_v55 = vld [vmem:[#allocation6 + $0x1e4] ss:$16 sps:$4 sm:$0xff]  }
 0x1ca   : > { %1993 = vmatprep.subr.bf16.mxu0 %v3354_v10  ;;  %2034 = vmatprep.subr.bf16.mxu1 %v3356_v12  ;;  %v3377_v10 = vcombine.low %v1465_v58, %v1473_v59  ;;  %v1441_v12 = vld [vmem:[%s4374_s26 + $0x70] sm:$0xff]  ;;  %v3364_v17 = vcombine.high %v1450_v7, %v1458_v8  ;;  %v3821_v42 = vld [vmem:[#allocation6 + $0x68] ss:$16 sps:$4 sm:$0xff]   ;;  %v3841_v54 = vld [vmem:[#allocation6 + $0xc] ss:$16 sps:$4 sm:$0xff]  }
 0x1cb   : > { %v3345_v22 = vcombine.low %v1433_v11, %v1441_v12  ;;  %v3827_v46 = vld [vmem:[#allocation6 + $0x48] ss:$16 sps:$4 sm:$0xff]   ;;  %v3850_v59 = vld [vmem:[#allocation6 + $0x1c4] ss:$16 sps:$4 sm:$0xff]  }
 0x1cc   : > { %v3833_v50 = vld [vmem:[#allocation6 + $0x28] ss:$16 sps:$4 sm:$0xff]   ;;  %v3856_v0 = vld [vmem:[#allocation6 + $0x1a4] ss:$16 sps:$4 sm:$0xff]  }
 0x1cd   : > { %1994 = vmatpush1.bf16.msra.mxu0 %v3353_v16  ;;  %2035 = vmatpush1.bf16.msra.mxu1 %v3355_v19  ;;  %v1442_v16 = vld [vmem:[%s4374_s26 + $0x78] sm:$0xff]  ;;  %v3363_v19 = vcombine.low %v1450_v7, %v1458_v8  ;;  %v3862_v4 = vld [vmem:[#allocation6 + $0x184] ss:$16 sps:$4 sm:$0xff]  }
 0x1ce   : > { %1995 = vmatprep.subr.bf16.mxu0 %v3338_v20  ;;  %2036 = vmatprep.subr.bf16.mxu1 %v3340_v23  ;;  %v3346_v20 = vcombine.high %v1433_v11, %v1441_v12  ;;  %v3348_v21 = vcombine.high %v1434_v15, %v1442_v16  ;;  %v3347_v23 = vcombine.low %v1434_v15, %v1442_v16  ;;  %v3845_v58 = vld [vmem:[#allocation6 + $0x1e8] ss:$16 sps:$4 sm:$0xff]   ;;  %v3868_v8 = vld [vmem:[#allocation6 + $0x164] ss:$16 sps:$4 sm:$0xff]  }
 0x1cf   : > { %v3851_v63 = vld [vmem:[#allocation6 + $0x1c8] ss:$16 sps:$4 sm:$0xff]   ;;  %v3874_v12 = vld [vmem:[#allocation6 + $0x144] ss:$16 sps:$4 sm:$0xff]  }
 0x1d0   : > { %v3857_v3 = vld [vmem:[#allocation6 + $0x1a8] ss:$16 sps:$4 sm:$0xff]   ;;  %v3880_v16 = vld [vmem:[#allocation6 + $0x124] ss:$16 sps:$4 sm:$0xff]  }
 0x1d1   : > { %1996 = vmatpush1.bf16.msra.mxu0 %v3337_v24  ;;  %2037 = vmatpush1.bf16.msra.mxu1 %v3339_v28  ;;  %v3796_v24 = vld [vmem:[#allocation6 + $0xe4] ss:$16 sps:$4 sm:$0xff]   ;;  %v3863_v7 = vld [vmem:[#allocation6 + $0x188] ss:$16 sps:$4 sm:$0xff]  }
 0x1d2   : > { %2071 = vmatprep.subr.bf16.mxu0 %v3390_v29  ;;  %2112 = vmatprep.subr.bf16.mxu1 %v3392_v32  ;;  %v3802_v28 = vld [vmem:[#allocation6 + $0xc4] ss:$16 sps:$4 sm:$0xff]   ;;  %v3805_v29 = vld [vmem:[#allocation6 + $0xcc] ss:$16 sps:$4 sm:$0xff]   ;;  %v3869_v11 = vld [vmem:[#allocation6 + $0x168] ss:$16 sps:$4 sm:$0xff]  }
 0x1d3   : > { %v3808_v32 = vld [vmem:[#allocation6 + $0xa4] ss:$16 sps:$4 sm:$0xff]   ;;  %v3875_v15 = vld [vmem:[#allocation6 + $0x148] ss:$16 sps:$4 sm:$0xff]  }
 0x1d4   : > { %3399 = vmatmul.mubr.msk.bf16.vlgmr.msra.gmra.mxu0 %vm1895_vm3, %v4817_v61  ;;  %3400 = vmatmul.mubr.msk.bf16.vlgmr.msra.gmra.mxu1 %vm1895_vm3, %v4817_v61 }
 0x1d5   : > { %2072 = vmatpush1.bf16.msra.mxu0 %v3389_v33  ;;  %2113 = vmatpush1.bf16.msra.mxu1 %v3391_v36  ;;  %v3811_v33 = vld [vmem:[#allocation6 + $0xac] ss:$16 sps:$4 sm:$0xff]   ;;  %v3814_v36 = vld [vmem:[#allocation6 + $0x84] ss:$16 sps:$4 sm:$0xff]  }
 0x1d6   : > { %2073 = vmatprep.subr.bf16.mxu0 %v3374_v37  ;;  %2114 = vmatprep.subr.bf16.mxu1 %v3376_v40  ;;  %v3812_v37 = vld [vmem:[#allocation6 + $0x80] ss:$16 sps:$4 sm:$0xff]   ;;  %v3823_v40 = vld [vmem:[#allocation6 + $0x6c] ss:$16 sps:$4 sm:$0xff]  }
 0x1d7   : > { %2095 = vmatprep.mubr.bf16.mxu0 %v4068_v27  ;;  %2136 = vmatprep.mubr.bf16.mxu1 %v4068_v27 }
 0x1d9   : > { %2074 = vmatpush1.bf16.msra.mxu0 %v3373_v41  ;;  %2115 = vmatpush1.bf16.msra.mxu1 %v3375_v44  ;;  %v3818_v41 = vld [vmem:[#allocation6 + $0x60] ss:$16 sps:$4 sm:$0xff]   ;;  %v3829_v44 = vld [vmem:[#allocation6 + $0x4c] ss:$16 sps:$4 sm:$0xff]  }
 0x1da   : > { %2075 = vmatprep.subr.bf16.mxu0 %v3358_v45  ;;  %2116 = vmatprep.subr.bf16.mxu1 %v3360_v48  ;;  %v3824_v45 = vld [vmem:[#allocation6 + $0x40] ss:$16 sps:$4 sm:$0xff]   ;;  %v3835_v48 = vld [vmem:[#allocation6 + $0x2c] ss:$16 sps:$4 sm:$0xff]  }
 0x1dd   : > { %2076 = vmatpush1.bf16.msra.mxu0 %v3357_v49  ;;  %2117 = vmatpush1.bf16.msra.mxu1 %v3359_v52  ;;  %v3830_v49 = vld [vmem:[#allocation6 + $0x20] ss:$16 sps:$4 sm:$0xff]   ;;  %v3838_v52 = vld [vmem:[#allocation6 + $0x4] ss:$16 sps:$4 sm:$0xff]  }
 0x1de   : > { %2077 = vmatprep.subr.bf16.mxu0 %v3342_v53  ;;  %2118 = vmatprep.subr.bf16.mxu1 %v3344_v56  ;;  %v3839_v53 = vld [vmem:[#allocation6 + $0x8] ss:$16 sps:$4 sm:$0xff]   ;;  %v3847_v56 = vld [vmem:[#allocation6 + $0x1ec] ss:$16 sps:$4 sm:$0xff]  }
 0x1e1   : > { %2078 = vmatpush1.bf16.msra.mxu0 %v3341_v57  ;;  %2119 = vmatpush1.bf16.msra.mxu1 %v3343_v60  ;;  %v3842_v57 = vld [vmem:[#allocation6 + $0x1e0] ss:$16 sps:$4 sm:$0xff]   ;;  %v3853_v60 = vld [vmem:[#allocation6 + $0x1cc] ss:$16 sps:$4 sm:$0xff]  }
 0x1e2   : > { %2153 = vmatprep.subr.bf16.mxu0 %v3394_v62  ;;  %2194 = vmatprep.subr.bf16.mxu1 %v3396_v2  ;;  %v3848_v62 = vld [vmem:[#allocation6 + $0x1c0] ss:$16 sps:$4 sm:$0xff]   ;;  %v3859_v2 = vld [vmem:[#allocation6 + $0x1ac] ss:$16 sps:$4 sm:$0xff]  }
 0x1e4   : > { %3401 = vmatmul.mubr.msk.bf16.vlgmr.msra.gmra.mxu0 %vm1895_vm3, %v4817_v61  ;;  %3402 = vmatmul.mubr.msk.bf16.vlgmr.msra.gmra.mxu1 %vm1895_vm3, %v4817_v61 }
 0x1e5   : > { %2154 = vmatpush1.bf16.msra.mxu0 %v3393_v1  ;;  %2195 = vmatpush1.bf16.msra.mxu1 %v3395_v5  ;;  %v3854_v1 = vld [vmem:[#allocation6 + $0x1a0] ss:$16 sps:$4 sm:$0xff]   ;;  %v3865_v5 = vld [vmem:[#allocation6 + $0x18c] ss:$16 sps:$4 sm:$0xff]  }
 0x1e6   : > { %2155 = vmatprep.subr.bf16.mxu0 %v3378_v6  ;;  %2196 = vmatprep.subr.bf16.mxu1 %v3380_v9  ;;  %v3860_v6 = vld [vmem:[#allocation6 + $0x180] ss:$16 sps:$4 sm:$0xff]   ;;  %v3871_v9 = vld [vmem:[#allocation6 + $0x16c] ss:$16 sps:$4 sm:$0xff]  }
 0x1e7   : > { %2177 = vmatprep.mubr.bf16.mxu0 %v4068_v27  ;;  %2218 = vmatprep.mubr.bf16.mxu1 %v4068_v27  ;;  %v3797_v27 = vld [vmem:[#allocation6 + $0xe8] ss:$16 sps:$4 sm:$0xff]  }
 0x1e9   : > { %2156 = vmatpush1.bf16.msra.mxu0 %v3377_v10  ;;  %2197 = vmatpush1.bf16.msra.mxu1 %v3379_v13  ;;  %v3866_v10 = vld [vmem:[#allocation6 + $0x160] ss:$16 sps:$4 sm:$0xff]   ;;  %v3877_v13 = vld [vmem:[#allocation6 + $0x14c] ss:$16 sps:$4 sm:$0xff]  }
 0x1ea   : > { %2157 = vmatprep.subr.bf16.mxu0 %v3362_v14  ;;  %2198 = vmatprep.subr.bf16.mxu1 %v3364_v17  ;;  %v3872_v14 = vld [vmem:[#allocation6 + $0x140] ss:$16 sps:$4 sm:$0xff]   ;;  %v3883_v17 = vld [vmem:[#allocation6 + $0x12c] ss:$16 sps:$4 sm:$0xff]  }
 0x1ed   : > { %2158 = vmatpush1.bf16.msra.mxu0 %v3361_v18  ;;  %2199 = vmatpush1.bf16.msra.mxu1 %v3363_v19  ;;  %v3878_v18 = vld [vmem:[#allocation6 + $0x120] ss:$16 sps:$4 sm:$0xff]   ;;  %v3881_v19 = vld [vmem:[#allocation6 + $0x128] ss:$16 sps:$4 sm:$0xff]  }
 0x1ee   : > { %2159 = vmatprep.subr.bf16.mxu0 %v3346_v20  ;;  %2200 = vmatprep.subr.bf16.mxu1 %v3348_v21  ;;  %v3884_v20 = vld [vmem:[#allocation6 + $0x100] ss:$16 sps:$4 sm:$0xff]   ;;  %v3886_v21 = vld [vmem:[#allocation6 + $0x104] ss:$16 sps:$4 sm:$0xff]  }
 0x1f1   : > { %2160 = vmatpush1.bf16.msra.mxu0 %v3345_v22  ;;  %2201 = vmatpush1.bf16.msra.mxu1 %v3347_v23  ;;  %v3887_v22 = vld [vmem:[#allocation6 + $0x108] ss:$16 sps:$4 sm:$0xff]   ;;  %v3889_v23 = vld [vmem:[#allocation6 + $0x10c] ss:$16 sps:$4 sm:$0xff]  }
 0x1f2   : > { %2702 = vmatprep.subr.bf16.mxu0 %v3796_v24  ;;  %2745 = vmatprep.subr.bf16.mxu1 %v3799_v25  ;;  %v4069_v24 = vmov 0.0   ;;  %v3891_v25 = vld [vmem:[%s5033_s7 + $0x78] sm:$0xff]  }
 0x1f4   : > { %3403 = vmatmul.mubr.msk.bf16.vlgmr.msra.gmra.mxu0 %vm1895_vm3, %v4817_v61  ;;  %3404 = vmatmul.mubr.msk.bf16.vlgmr.msra.gmra.mxu1 %vm1895_vm3, %v4817_v61  ;;  %v3817_v61 = vld [vmem:[#allocation6 + $0x8c] ss:$16 sps:$4 sm:$0xff]  }
 0x1f5   : > { %2703 = vmatpush1.bf16.msra.mxu0 %v3794_v26  ;;  %2746 = vmatpush1.bf16.msra.mxu1 %v3797_v27 }
 0x1f6   : > { %2704 = vmatprep.subr.bf16.mxu0 %v3802_v28  ;;  %2747 = vmatprep.subr.bf16.mxu1 %v3805_v29 }
 0x1f9   : > { %2705 = vmatpush1.bf16.msra.mxu0 %v3800_v30  ;;  %2748 = vmatpush1.bf16.msra.mxu1 %v3803_v31 }
 0x1fa   : > { %2706 = vmatprep.subr.bf16.mxu0 %v3808_v32  ;;  %2749 = vmatprep.subr.bf16.mxu1 %v3811_v33 }
 0x1fd   : > { %2707 = vmatpush1.bf16.msra.mxu0 %v3806_v34  ;;  %2750 = vmatpush1.bf16.msra.mxu1 %v3809_v35 }
 0x1fe   : > { %2708 = vmatprep.subr.bf16.mxu0 %v3814_v36  ;;  %2751 = vmatprep.subr.bf16.mxu1 %v3817_v61 }
 0x201   : > { %2709 = vmatpush1.bf16.msra.mxu0 %v3812_v37  ;;  %2752 = vmatpush1.bf16.msra.mxu1 %v3815_v38  ;;  %v1495_v38 = vlaneseq }
 0x202   : > { %2710 = vmatprep.subr.bf16.mxu0 %v3820_v39  ;;  %2753 = vmatprep.subr.bf16.mxu1 %v3823_v40 }
 0x205   : > { %2711 = vmatpush1.bf16.msra.mxu0 %v3818_v41  ;;  %2754 = vmatpush1.bf16.msra.mxu1 %v3821_v42  ;;  %v4887_v42 = vshrl.u32 %v1495_v38, 7 }
 0x206   : > { %2712 = vmatprep.subr.bf16.mxu0 %v3826_v43  ;;  %2755 = vmatprep.subr.bf16.mxu1 %v3829_v44  ;;  %v1491_v44 = vld [vmem:[%s4376_s23] sm:$0xff] }
 0x207   : > { %v4890_v43 = vsub.s32 2, %v4887_v42 }
 0x209   : > { %2713 = vmatpush1.bf16.msra.mxu0 %v3824_v45  ;;  %2756 = vmatpush1.bf16.msra.mxu1 %v3827_v46  ;;  %v4894_v46 = vsub.s32 0, %v4887_v42 }
 0x20a   : > { %2714 = vmatprep.subr.bf16.mxu0 %v3832_v47  ;;  %2757 = vmatprep.subr.bf16.mxu1 %v3835_v48  ;;  %v1506_v47 = vrot.slane %v1491_v44, %v4890_v43  ;;  %v4898_v48 = vsub.s32 3, %v4887_v42 }
 0x20d   : > { %2715 = vmatpush1.bf16.msra.mxu0 %v3830_v49  ;;  %2758 = vmatpush1.bf16.msra.mxu1 %v3833_v50 }
 0x20e   : > { %2716 = vmatprep.subr.bf16.mxu0 %v3838_v52  ;;  %2759 = vmatprep.subr.bf16.mxu1 %v3841_v54  ;;  %v1492_v52 = vld [vmem:[%s4376_s23 + $0x8] sm:$0xff]  ;;  %v4903_v54 = vsub.s32 1, %v4887_v42 }
 0x211   : > { %2717 = vmatpush1.bf16.msra.mxu0 %v3836_v51  ;;  %2760 = vmatpush1.bf16.msra.mxu1 %v3839_v53  ;;  %v1517_v51 = vsub.s32 5, %v4887_v42 }
 0x212   : > { %2718 = vmatprep.subr.bf16.mxu0 %v3844_v55  ;;  %2761 = vmatprep.subr.bf16.mxu1 %v3847_v56  ;;  %v1513_v55 = vsub.s32 4, %v4887_v42 }
 0x215   : > { %2719 = vmatpush2.bf16.msra.mxu0 %v3842_v57  ;;  %2762 = vmatpush2.bf16.msra.mxu1 %v3845_v58  ;;  %v1498_v57 = vrot.slane %v1491_v44, %v4894_v46 }
 0x216   : > { %2720 = vmatprep.subr.bf16.mxu0 %v3850_v59  ;;  %2763 = vmatprep.subr.bf16.mxu1 %v3853_v60  ;;  %v1510_v59 = vrot.slane %v1491_v44, %v4898_v48  ;;  %v1525_v60 = vsub.s32 7, %v4887_v42 }
 0x219   : > { %2721 = vmatpush2.bf16.msra.mxu0 %v3848_v62  ;;  %2764 = vmatpush2.bf16.msra.mxu1 %v3851_v63  ;;  %v1538_v63 = vrot.slane %v1492_v52, %v4890_v43 }
 0x21a   : > { %2722 = vmatprep.subr.bf16.mxu0 %v3856_v0  ;;  %2765 = vmatprep.subr.bf16.mxu1 %v3859_v2  ;;  %v1521_v2 = vsub.s32 6, %v4887_v42 }
 0x21d   : > { %2723 = vmatpush2.bf16.msra.mxu0 %v3854_v1  ;;  %2766 = vmatpush2.bf16.msra.mxu1 %v3857_v3  ;;  %v1518_v1 = vrot.slane %v1491_v44, %v1517_v51 }
 0x21e   : > { %2724 = vmatprep.subr.bf16.mxu0 %v3862_v4  ;;  %2767 = vmatprep.subr.bf16.mxu1 %v3865_v5  ;;  %v1502_v4 = vrot.slane %v1491_v44, %v4903_v54  ;;  %v1514_v5 = vrot.slane %v1491_v44, %v1513_v55 }
 0x221   : > { %2725 = vmatpush2.bf16.msra.mxu0 %v3860_v6  ;;  %2768 = vmatpush2.bf16.msra.mxu1 %v3863_v7  ;;  %v1542_v6 = vrot.slane %v1492_v52, %v4898_v48 }
 0x222   : > { %2726 = vmatprep.subr.bf16.mxu0 %v3868_v8  ;;  %2769 = vmatprep.subr.bf16.mxu1 %v3871_v9 }
 0x225   : > { %2727 = vmatpush2.bf16.msra.mxu0 %v3866_v10  ;;  %2770 = vmatpush2.bf16.msra.mxu1 %v3869_v11  ;;  %v1526_v10 = vrot.slane %v1491_v44, %v1525_v60  ;;  %v1530_v11 = vrot.slane %v1492_v52, %v4894_v46 }
 0x226   : > { %2728 = vmatprep.subr.bf16.mxu0 %v3874_v12  ;;  %2771 = vmatprep.subr.bf16.mxu1 %v3877_v13  ;;  %v1522_v13 = vrot.slane %v1491_v44, %v1521_v2 }
 0x229   : > { %2729 = vmatpush2.bf16.msra.mxu0 %v3872_v14  ;;  %2772 = vmatpush2.bf16.msra.mxu1 %v3875_v15 }
 0x22a   : > { %2730 = vmatprep.subr.bf16.mxu0 %v3880_v16  ;;  %2773 = vmatprep.subr.bf16.mxu1 %v3883_v17 }
 0x22d   : > { %2731 = vmatpush2.bf16.msra.mxu0 %v3878_v18  ;;  %2774 = vmatpush2.bf16.msra.mxu1 %v3881_v19  ;;  %v1546_v18 = vrot.slane %v1492_v52, %v1513_v55 }
 0x22e   : > { %2732 = vmatprep.subr.bf16.mxu0 %v3886_v21  ;;  %2775 = vmatprep.subr.bf16.mxu1 %v3889_v23 }
 0x231   : > { %2733 = vmatpush2.bf16.msra.mxu0 %v3884_v20  ;;  %2776 = vmatpush2.bf16.msra.mxu1 %v3887_v22 }
 0x232   : > { %3699 = vmatprep.subr.bf16.mxu1 %v4069_v24  ;;  %3568 = vmatprep.subr.bf16.mxu0 %v3891_v25 }
 0x284   : > { %v1933_v26 = vpop.f32.mrf.mxu0  ;;  %v1974_v27 = vpop.f32.mrf.mxu1 }
 0x285   : > { %v1975_v58 = vadd.f32 %v1974_v27, %v1506_v47  ;;  %v1934_v7 = vadd.f32 %v1933_v26, %v1498_v57  ;;  %v1534_v26 = vrot.slane %v1492_v52, %v4903_v54  ;;  %v1554_v27 = vrot.slane %v1492_v52, %v1521_v2 }
 0x286   : > { %v1935_v28 = vpop.f32.mrf.mxu0  ;;  %v1976_v29 = vpop.f32.mrf.mxu1 }
 0x287   : > { %v2229_v8 = vmax.f32 %v1975_v58, 0.0  ;;  %v1977_v9 = vadd.f32 %v1976_v29, %v1510_v59  ;;  %v1936_v15 = vadd.f32 %v1935_v28, %v1502_v4  ;;  %v2227_v19 = vmax.f32 %v1934_v7, 0.0 }
 0x288   : > { %v1937_v30 = vpop.f32.mrf.mxu0  ;;  %v1978_v31 = vpop.f32.mrf.mxu1 }
 0x289   : > { %v2245_v20 = vrot.slane %v2229_v8, 6  ;;  %v2230_v21 = vmax.f32 %v1977_v9, 0.0  ;;  %v1550_v31 = vrot.slane %v1492_v52, %v1517_v51 }
 0x28a   : > { %v1938_v32 = vpop.f32.mrf.mxu0  ;;  %v1979_v33 = vpop.f32.mrf.mxu1 }
 0x28b   : > { %v2228_v32 = vmax.f32 %v1936_v15, 0.0  ;;  %v2246_v38 = vrot.slane %v2230_v21, 6  ;;  %v3890_v21 = vld [vmem:[%s5033_s7 + $0xb8] sm:$0xff]  }
 0x294   : > { %v2015_v34 = vpop.f32.mrf.mxu0  ;;  %v2056_v35 = vpop.f32.mrf.mxu1 }
 0x295   : > { %v2016_v16 = vadd.f32 %v2015_v34, %v1514_v5  ;;  %v2057_v29 = vadd.f32 %v2056_v35, %v1522_v13  ;;  %v1558_v34 = vrot.slane %v1492_v52, %v1525_v60 }
 0x296   : > { %v2017_v36 = vpop.f32.mrf.mxu0  ;;  %v2058_v61 = vpop.f32.mrf.mxu1 }
 0x297   : > { %v2018_v14 = vadd.f32 %v2017_v36, %v1518_v1  ;;  %v2059_v22 = vadd.f32 %v2058_v61, %v1526_v10  ;;  %v2231_v33 = vmax.f32 %v2016_v16, 0.0 }
 0x298   : > { %v2019_v37 = vpop.f32.mrf.mxu0  ;;  %v2060_v39 = vpop.f32.mrf.mxu1 }
 0x299   : > { %v2232_v30 = vmax.f32 %v2018_v14, 0.0  ;;  %v2280_v37 = vsel %vm2279_vm4, %v2227_v19, %v2245_v20  ;;  %v2234_v39 = vmax.f32 %v2059_v22, 0.0  ;;  %v2251_v57 = vrot.slane %v2231_v33, 4  ;;  %v3892_v22 = vld [vmem:[%s5033_s7 + $0x38] sm:$0xff]   ;;  %v3899_v33 = vld [vmem:[%s5033_s7 + $0xa0] sm:$0xff]  }
 0x29a   : > { %v2020_v40 = vpop.f32.mrf.mxu0  ;;  %v2061_v41 = vpop.f32.mrf.mxu1 }
 0x29b   : > { %v2252_v35 = vrot.slane %v2232_v30, 4  ;;  %v3896_v30 = vld [vmem:[%s5033_s7 + $0xa8] sm:$0xff]  }
 0x2a4   : > { %v2097_v45 = vpop.f32.mrf.mxu0  ;;  %v2138_v49 = vpop.f32.mrf.mxu1 }
 0x2a5   : > { %v2139_v12 = vadd.f32 %v2138_v49, %v1538_v63  ;;  %v2098_v23 = vadd.f32 %v2097_v45, %v1530_v11  ;;  %v2258_v63 = vrot.slane %v2234_v39, 2  ;;  %v3906_v39 = vld [vmem:[%s5033_s7 + $0x50] sm:$0xff]  }
 0x2a6   : > { %v2099_v50 = vpop.f32.mrf.mxu0  ;;  %v2140_v53 = vpop.f32.mrf.mxu1 }
 0x2a7   : > { %v2141_v17 = vadd.f32 %v2140_v53, %v1542_v6  ;;  %v2237_v25 = vmax.f32 %v2139_v12, 0.0  ;;  %v2235_v41 = vmax.f32 %v2098_v23, 0.0  ;;  %v2100_v45 = vadd.f32 %v2099_v50, %v1534_v26  ;;  %v3893_v26 = vld [vmem:[%s5033_s7 + $0xb0] sm:$0xff]  }
 0x2a8   : > { %v2101_v56 = vpop.f32.mrf.mxu0  ;;  %v2142_v62 = vpop.f32.mrf.mxu1  ;;  %v2233_v53 = vmax.f32 %v2057_v29, 0.0  ;;  %v2283_v12 = vsel %vm2282_vm5, %v2280_v37, %v2251_v57  ;;  %v3897_v29 = vld [vmem:[%s5033_s7 + $0x68] sm:$0xff]   ;;  %v3904_v37 = vld [vmem:[%s5033_s7 + $0x18] sm:$0xff]  }
 0x2a9   : > { %v2238_v36 = vmax.f32 %v2141_v17, 0.0  ;;  %v2263_v44 = vrot.slane %v2237_v25, 6  ;;  %v2281_v62 = vsel %vm2279_vm4, %v2228_v32, %v2246_v38  ;;  %v3894_v25 = vld [vmem:[%s5033_s7 + $0x70] sm:$0xff]   ;;  %v3900_v32 = vld [vmem:[%s5033_s7 + $0x60] sm:$0xff]  }
 0x2aa   : > { %v2102_v0 = vpop.f32.mrf.mxu0  ;;  %v2143_v3 = vpop.f32.mrf.mxu1  ;;  %v2257_v7 = vrot.slane %v2233_v53, 2  ;;  %v2284_v8 = vsel %vm2282_vm5, %v2281_v62, %v2252_v35  ;;  %v3905_v38 = vld [vmem:[%s5033_s7 + $0x90] sm:$0xff]   ;;  %v2360_v53 = vld [vmem:[#allocation8] sm:$0xf] }
 0x2ab   : > { %v2264_v58 = vrot.slane %v2238_v36, 6  ;;  %v2288_v50 = vsel %vm2279_vm4, %v2235_v41, %v2263_v44  ;;  %v2236_v3 = vmax.f32 %v2100_v45, 0.0  ;;  %v2287_v17 = vsel %vm2285_vm6, %v2284_v8, %v2258_v63  ;;  %v3901_v36 = vld [vmem:[%s5033_s7 + $0x20] sm:$0xff]   ;;  %v3909_v41 = vld [vmem:[%s5033_s7 + $0x48] sm:$0xff]  }
 0x2ac   : > { %v2286_v19 = vsel %vm2285_vm6, %v2283_v12, %v2257_v7  ;;  %v3910_v44 = vld [vmem:[%s5033_s7 + $0x8] sm:$0xff]   ;;  %v3911_v45 = vld [vmem:[%s5033_s7 + $0x80] sm:$0xff]   ;;  %v2373_v35 = vrot.slane %v2360_v53, %v4890_v43  ;;  %v2365_v57 = vrot.slane %v2360_v53, %v4894_v46  ;;  %v4071_v12 = vmov 1983009808  }
 0x2ad   : > { %v2289_v13 = vsel %vm2279_vm4, %v2236_v3, %v2264_v58 }
 0x2b4   : > { %v2179_v28 = vpop.f32.mrf.mxu0  ;;  %v2220_v61 = vpop.f32.mrf.mxu1 }
 0x2b5   : > { %v2180_v40 = vadd.f32 %v2179_v28, %v1546_v18  ;;  %v2221_v47 = vadd.f32 %v2220_v61, %v1554_v27  ;;  %v3895_v27 = vld [vmem:[%s5033_s7 + $0x30] sm:$0xff]   ;;  %v3903_v28 = vld [vmem:[%s5033_s7 + $0x58] sm:$0xff]   ;;  %v3908_v61 = vld [vmem:[%s5033_s7 + $0x88] sm:$0xff]  }
 0x2b6   : > { %v2181_v49 = vpop.f32.mrf.mxu0  ;;  %v2222_v56 = vpop.f32.mrf.mxu1 }
 0x2b7   : > { %v2239_v55 = vmax.f32 %v2180_v40, 0.0  ;;  %v2182_v51 = vadd.f32 %v2181_v49, %v1550_v31  ;;  %v2241_v59 = vmax.f32 %v2221_v47, 0.0  ;;  %v2223_v52 = vadd.f32 %v2222_v56, %v1558_v34  ;;  %v3898_v31 = vld [vmem:[%s5033_s7 + $0x28] sm:$0xff]   ;;  %v3902_v34 = vld [vmem:[%s5033_s7 + $0x98] sm:$0xff]   ;;  %v3907_v40 = vld [vmem:[%s5033_s7 + $0x10] sm:$0xff]  }
 0x2b8   : > { %v2183_v60 = vpop.f32.mrf.mxu0  ;;  %v2224_v1 = vpop.f32.mrf.mxu1  ;;  %v3912_v47 = vld [vmem:[%s5033_s7 + $0x40] sm:$0xff]   ;;  %v2369_v56 = vrot.slane %v2360_v53, %v4903_v54 }
 0x2b9   : > { %v2269_v0 = vrot.slane %v2239_v55, 4  ;;  %v2240_v2 = vmax.f32 %v2182_v51, 0.0  ;;  %v2275_v4 = vrot.slane %v2241_v59, 2  ;;  %v2242_v5 = vmax.f32 %v2223_v52, 0.0  ;;  %v3913_v49 = vld [vmem:[%s5033_s7] sm:$0xff]  }
 0x2ba   : > { %v2184_v6 = vpop.f32.mrf.mxu0  ;;  %v2225_v11 = vpop.f32.mrf.mxu1 }
 0x2bb   : > { %v2290_v9 = vsel %vm2282_vm5, %v2288_v50, %v2269_v0  ;;  %v2270_v10 = vrot.slane %v2240_v2, 4  ;;  %v2276_v14 = vrot.slane %v2242_v5, 2 }
 0x2bc   : > { %v2292_v15 = vsel %vm2285_vm6, %v2290_v9, %v2275_v4 }
 0x2bd   : > { %v2291_v16 = vsel %vm2282_vm5, %v2289_v13, %v2270_v10  ;;  %v2294_v23 = vpack.c.bf16 %v2292_v15, %v2286_v19  ;;  %v3084_v13 = vunpack.c.l.s4 %v4071_v12 }
 0x2be   : > { %v2293_v18 = vsel %vm2285_vm6, %v2291_v16, %v2276_v14  ;;  %v3469_v16 = vld [vmem:[#allocation9] ss:$0 sm:$0xff] }
 0x2bf   : > { %v2295_v20 = vpack.c.bf16 %v2293_v18, %v2287_v17  ;;  %v2377_v18 = vrot.slane %v2360_v53, %v4898_v48 }
 0x2c1   : > { %2734 = vmatprep.mubr.bf16.mxu0 %v2295_v20  ;;  %2777 = vmatprep.mubr.bf16.mxu1 %v2295_v20  ;;  %v3085_v20 = vunpack.c.0.s8 %v3084_v13 }
 0x2c2   : > { %2735 = vmatmul.mubr.bf16.vlgmr.msra.gmra.mxu0 %v2294_v23  ;;  %2778 = vmatmul.mubr.bf16.vlgmr.msra.gmra.mxu1 %v2294_v23 }
 0x2c3   : > { %3700 = vmatpush3.bf16.msra.mxu1 %v3890_v21  ;;  %3569 = vmatpush3.bf16.msra.mxu0 %v3892_v22 }
 0x2c4   : > { %3701 = vmatprep.subr.bf16.mxu1 %v4069_v24  ;;  %3570 = vmatprep.subr.bf16.mxu0 %v3894_v25 }
 0x2c5   : > { %3715 = vmatprep.mubr.msk.bf16.mxu1 %vm4070_vm7, %v4069_v24 }
 0x2c7   : > { %3702 = vmatpush3.bf16.msra.mxu1 %v3893_v26  ;;  %3571 = vmatpush3.bf16.msra.mxu0 %v3895_v27 }
 0x2c8   : > { %3703 = vmatprep.subr.bf16.mxu1 %v4069_v24  ;;  %3572 = vmatprep.subr.bf16.mxu0 %v3897_v29  ;;  %v3088_v29 = vsub.s32 %v3085_v20, %v4887_v42 }
 0x2cb   : > { %3704 = vmatpush3.bf16.msra.mxu1 %v3896_v30  ;;  %3573 = vmatpush3.bf16.msra.mxu0 %v3898_v31 }
 0x2cc   : > { %3705 = vmatprep.subr.bf16.mxu1 %v4069_v24  ;;  %3574 = vmatprep.subr.bf16.mxu0 %v3900_v32 }
 0x2cf   : > { %3706 = vmatpush3.bf16.msra.mxu1 %v3899_v33  ;;  %3575 = vmatpush3.bf16.msra.mxu0 %v3901_v36 }
 0x2d0   : > { %3707 = vmatprep.subr.bf16.mxu1 %v4069_v24  ;;  %3576 = vmatprep.subr.bf16.mxu0 %v3903_v28 }
 0x2d3   : > { %3708 = vmatpush3.bf16.msra.mxu1 %v3902_v34  ;;  %3577 = vmatpush3.bf16.msra.mxu0 %v3904_v37 }
 0x2d4   : > { %3709 = vmatprep.subr.bf16.mxu1 %v4069_v24  ;;  %3578 = vmatprep.subr.bf16.mxu0 %v3906_v39 }
 0x2d7   : > { %3710 = vmatpush3.bf16.msra.mxu1 %v3905_v38  ;;  %3579 = vmatpush3.bf16.msra.mxu0 %v3907_v40 }
 0x2d8   : > { %3711 = vmatprep.subr.bf16.mxu1 %v4069_v24  ;;  %3580 = vmatprep.subr.bf16.mxu0 %v3909_v41 }
 0x2db   : > { %3712 = vmatpush3.bf16.msra.mxu1 %v3908_v61  ;;  %3581 = vmatpush3.bf16.msra.mxu0 %v3910_v44 }
 0x2dc   : > { %3713 = vmatprep.subr.bf16.mxu1 %v4069_v24  ;;  %3582 = vmatprep.subr.bf16.mxu0 %v3912_v47 }
 0x2df   : > { %3714 = vmatpush3.bf16.msra.mxu1 %v3911_v45  ;;  %3583 = vmatpush3.bf16.msra.mxu0 %v3913_v49 }
 0x382   : > { %v2736_v55 = vpop.f32.mrf.mxu0  ;;  %v2779_v51 = vpop.f32.mrf.mxu1 }
 0x383   : > { %v2780_v52 = vadd.f32 %v2779_v51, %v2373_v35  ;;  %v2737_v1 = vadd.f32 %v2736_v55, %v2365_v57 }
 0x384   : > { %v2738_v58 = vpop.f32.mrf.mxu0  ;;  %v2781_v59 = vpop.f32.mrf.mxu1 }
 0x385   : > { %v2739_v63 = vadd.f32 %v2738_v58, %v2369_v56  ;;  %v2790_v50 = vmax.f32 %v2780_v52, 0.0  ;;  %v2788_v54 = vmax.f32 %v2737_v1, 0.0  ;;  %v2782_v26 = vadd.f32 %v2781_v59, %v2377_v18 }
 0x386   : > { %v2740_v60 = vpop.f32.mrf.mxu0  ;;  %v2783_v62 = vpop.f32.mrf.mxu1 }
 0x387   : > { %v2741_v0 = vadd.f32 %v2740_v60, %v2365_v57  ;;  %v2784_v2 = vadd.f32 %v2783_v62, %v2373_v35  ;;  %v2789_v5 = vmax.f32 %v2739_v63, 0.0 }
 0x388   : > { %v2742_v24 = vpop.f32.mrf.mxu0  ;;  %v2785_v9 = vpop.f32.mrf.mxu1 }
 0x389   : > { %v2793_v3 = vmax.f32 %v2784_v2, 0.0  ;;  %v2743_v4 = vadd.f32 %v2742_v24, %v2369_v56  ;;  %v2791_v43 = vmax.f32 %v2741_v0, 0.0  ;;  %v2786_v33 = vadd.f32 %v2785_v9, %v2377_v18 }
 0x38b   : > { %v2796_v6 = vpack.c.bf16 %v2793_v3, %v2790_v50  ;;  %v2792_v7 = vmax.f32 %v2743_v4, 0.0  ;;  %v2794_v46 = vpack.c.bf16 %v2791_v43, %v2788_v54 }
 0x38d   : > { %v2795_v8 = vpack.c.bf16 %v2792_v7, %v2789_v5  ;;  %3716 = vmatmul.mubr.bf16.vlgmr.msra.gmra.mxu1 %v2796_v6 }
 0x38f   : > { %3028 = vmatprep.mubr.bf16.mxu0 %v2795_v8 }
 0x390   : > { %3029 = vmatmul.mubr.bf16.vlgmr.msra.gmra.mxu0 %v2794_v46 }
 0x44d   : > { %v3071_v10 = vpop.f32.mrf.mxu1 }
 0x44f   : > { %v3717_v11 = vpop.f32.mrf.mxu1 }
 0x450   : > { %v3584_v14 = vpop.f32.mrf.mxu0 }
 0x451   : > { %v3074_v15 = vpop.f32.mrf.mxu1 }
 0x452   : > { %v3585_v17 = vpop.f32.mrf.mxu0 }
 0x453   : > { %v3586_v19 = vadd.f32 %v3585_v17, %v3584_v14  ;;  %v3718_v21 = vpop.f32.mrf.mxu1 }
 0x454   : > { %v3587_v22 = vpop.f32.mrf.mxu0 }
 0x455   : > { %v3031_v23 = vadd.f32 %v3586_v19, %v3469_v16 }
 0x456   : > { %v3588_v25 = vpop.f32.mrf.mxu0 }
 0x457   : > { %v3072_v27 = vadd.f32 %v3071_v10, %v3031_v23  ;;  %v3589_v30 = vadd.f32 %v3588_v25, %v3587_v22 }
 0x459   : > { %v3078_v31 = vadd.f32 %v3072_v27, %v2782_v26  ;;  %v3034_v32 = vadd.f32 %v3589_v30, %v3469_v16 }
 0x45b   : > { %v3082_v48 = vcombine.high %v3078_v31, %v3078_v31  ;;  %v3089_v36 = vrot.slane %v3078_v31, %v3088_v29  ;;  %3494 = vst.sshfl [vmem:[%s4394_s16] sm:$0x3 pattern:$0x76325410] %v3078_v31  ;;  %v3075_v28 = vadd.f32 %v3074_v15, %v3034_v32 }
 0x45d   : > { %v3096_v34 = vrot.slane %v3082_v48, %v3088_v29  ;;  %v3097_v37 = vcombine.high %v3089_v36, %v3089_v36  ;;  %3495 = vst.sshfl [vmem:[%s4394_s16 + $0x4] sm:$0x3 pattern:$0x76325410] %v3082_v48  ;;  %v3079_v38 = vadd.f32 %v3075_v28, %v2786_v33 }
 0x45f   : > { %v3098_v39 = vcombine.high %v3096_v34, %v3096_v34  ;;  %3125 = vst [vmem:[%s4394_s16 + $0x2] sm:$0x3] %v3097_v37  ;;  %v3099_v42 = vcombine.high %v3079_v38, %v3079_v38  ;;  %v3106_v40 = vrot.slane %v3079_v38, %v3088_v29  ;;  %3496 = vst.sshfl [vmem:[%s4394_s16 + $0x8] sm:$0x3 pattern:$0x76325410] %v3079_v38 }
 0x461   : > { %3127 = vst [vmem:[%s4394_s16 + $0x6] sm:$0x3] %v3098_v39  ;;  %v3113_v61 = vrot.slane %v3099_v42, %v3088_v29  ;;  %v3114_v41 = vcombine.high %v3106_v40, %v3106_v40  ;;  %3497 = vst.sshfl [vmem:[%s4394_s16 + $0xc] sm:$0x3 pattern:$0x76325410] %v3099_v42 }
 0x463   : > { %v3115_v44 = vcombine.high %v3113_v61, %v3113_v61  ;;  %3129 = vst [vmem:[%s4394_s16 + $0xa] sm:$0x3] %v3114_v41 }
 0x465   : > { %3131 = vst [vmem:[%s4394_s16 + $0xe] sm:$0x3] %v3115_v44 }
 0x466 PF: > { %p21_p11 = scmp.ge.s32.totalorder %s4144_s14, 6   ;;  %s5050_s30 = smov %s4052_s10 }
 0x467   : > { %s5051_s10 = smov %s4056_s11  ;;  %s5052_s11 = smov %s4154_s17 }
 0x468   : > { %s5053_s12 = smov %s4144_s14  ;;  %23 = sbr.rel (!%p21_p11) target bundleno = 7 (0x7), region = 143 }
 0x46d   :  { %3154 = vsyncpa [#allocation5], 1 }
 0x46e   :  { %3156 = vsyncpa [#allocation5 + $0x1], 1 }
 0x46f   :  { %3157 = vsyncpa [#allocation7], 1 }
 0x470   :  { %3158 = vsyncpa [#allocation10], 1 }

</bundles_post_ra>
